<compile_context>
chip_gen: v7x
topology: tpu7x:2x2x1
jax: 0.10.0
libtpu: 0.0.40
codegen_flags: <defaults>
</compile_context>

<pallas_src>
import functools

import jax
import jax.numpy as jnp
from jax.experimental import pallas as pl
from jax.experimental.pallas import tpu as pltpu

LN_EPS = 1e-5


def _round_up(x, m):
    return (x + m - 1) // m * m


def _layernorm(x, w, b):
    mu = jnp.mean(x, axis=-1, keepdims=True)
    var = jnp.mean((x - mu) ** 2, axis=-1, keepdims=True)
    return (x - mu) * jax.lax.rsqrt(var + LN_EPS) * w + b


# ---------------------------------------------------------------------------
# Kernel: full encoder stack (all layers, all batch rows) + final LayerNorm
# ---------------------------------------------------------------------------
def encoder_stack_kernel(x_ref, mask_ref,
                         ln1w_ref, ln1b_ref,
                         wqkv_ref, bqkv_ref, wo_ref, bo_ref,
                         ln2w_ref, ln2b_ref,
                         w1_ref, b1_ref, w2_ref, b2_ref,
                         flnw_ref, flnb_ref,
                         out_ref,
                         x_acc, h2_buf, mlp_acc, q_buf, k_buf, v_buf, ctx_buf,
                         *, batch, seq, num_heads, head_dim):
    l = pl.program_id(0)          # layer index
    i = pl.program_id(1)          # MLP intermediate-dim tile index
    n_layers = pl.num_programs(0)
    n_itiles = pl.num_programs(1)

    Dh = num_heads * head_dim

    # ------------- attention + LN phase: runs once per layer (i == 0) -------------
    @pl.when(i == 0)
    def _attention_phase():
        @pl.when(l == 0)
        def _load_residual_stream():
            x_acc[...] = x_ref[...].astype(jnp.float32)       # (B*S, D)

        x = x_acc[...]                                        # (B*S, D) f32 residual
        h = _layernorm(x, ln1w_ref[0], ln1b_ref[0])

        # fused QKV projection over ALL batch rows at once (bf16 weights, f32 accum);
        # the 1/sqrt(head_dim) scale is already folded into the Wq columns / bq.
        qkv = jnp.dot(h.astype(jnp.bfloat16), wqkv_ref[0],
                      preferred_element_type=jnp.float32) + bqkv_ref[0]   # (B*S, 3*Dh)

        # stage per (batch, head) q/k/v into (B*H, S, hd) VMEM buffers (static slices)
        for b in range(batch):
            r0 = b * seq
            for hh in range(num_heads):
                c = hh * head_dim
                bh = b * num_heads + hh
                q_buf[bh] = qkv[r0:r0 + seq, c:c + head_dim].astype(jnp.bfloat16)
                k_buf[bh] = qkv[r0:r0 + seq, Dh + c:Dh + c + head_dim].astype(jnp.bfloat16)
                v_buf[bh] = qkv[r0:r0 + seq, 2 * Dh + c:2 * Dh + c + head_dim].astype(jnp.bfloat16)

        # batched scores over (batch*heads): (B*H, Sq, Sk)
        s = jax.lax.dot_general(q_buf[...], k_buf[...],
                                dimension_numbers=(((2,), (2,)), ((0,), (0,))),
                                preferred_element_type=jnp.float32)
        s = s + mask_ref[...]                                 # (S, S) broadcasts over B*H
        m = jnp.max(s, axis=-1, keepdims=True)
        p = jnp.exp(s - m)
        p = p * pl.reciprocal(jnp.sum(p, axis=-1, keepdims=True), approx=True)

        # batched context: (B*H, Sq, hd)
        ctx = jax.lax.dot_general(p.astype(jnp.bfloat16), v_buf[...],
                                  dimension_numbers=(((2,), (1,)), ((0,), (0,))),
                                  preferred_element_type=jnp.float32)

        # concatenate heads back into (B*S, Dh), then ONE output projection matmul
        for b in range(batch):
            r0 = b * seq
            for hh in range(num_heads):
                bh = b * num_heads + hh
                ctx_buf[r0:r0 + seq, hh * head_dim:(hh + 1) * head_dim] = \
                    ctx[bh].astype(jnp.bfloat16)
        attn = jnp.dot(ctx_buf[...], wo_ref[0],
                       preferred_element_type=jnp.float32) + bo_ref[0]

        x = x + attn                                          # residual 1
        x_acc[...] = x
        h2_buf[...] = _layernorm(x, ln2w_ref[0], ln2b_ref[0]).astype(jnp.bfloat16)
        mlp_acc[...] = jnp.zeros_like(mlp_acc)

    # --------------- MLP: streamed over intermediate-dim tiles (every i) ----------
    f = jnp.dot(h2_buf[...], w1_ref[0],
                preferred_element_type=jnp.float32) + b1_ref[0]           # (B*S, TI)
    # exact erf GELU (matches torch.nn.functional.gelu used by the reference module)
    f = 0.5 * f * (1.0 + jax.lax.erf(f * 0.7071067811865476))
    mlp_acc[...] += jnp.dot(f.astype(jnp.bfloat16), w2_ref[0],
                            preferred_element_type=jnp.float32)

    # ------------------------------ finish the layer ------------------------------
    @pl.when(i == n_itiles - 1)
    def _finish_layer():
        x = x_acc[...] + mlp_acc[...] + b2_ref[0]             # residual 2 (+ fc2 bias)
        x_acc[...] = x

        @pl.when(l == n_layers - 1)
        def _final_layernorm_and_store():
            out_ref[...] = _layernorm(x, flnw_ref[...], flnb_ref[...]).astype(out_ref.dtype)


# ---------------------------------------------------------------------------
# pallas_call wrapper
# ---------------------------------------------------------------------------
def clip_encoder_stack(x_flat, mask, layers, final_ln_w, final_ln_b, *,
                       batch, seq, num_heads, head_dim, mlp_tile,
                       wqkv_buffers=2,                  # set 3 on v6e (128 MiB VMEM)
                       vmem_limit_bytes=48 * 1024 * 1024):
    BS, D = x_flat.shape
    assert BS == batch * seq
    L = layers['wqkv'].shape[0]
    Dh = num_heads * head_dim
    I = layers['w1'].shape[-1]
    assert I % mlp_tile == 0
    NI = I // mlp_tile

    kern = functools.partial(encoder_stack_kernel, batch=batch, seq=seq,
                             num_heads=num_heads, head_dim=head_dim)

    # Optional deeper buffering for the big fused-QKV weight block (v6e: spend the
    # spare VMEM to hide the layer-boundary 9.4 MiB DMA burst; keep 2 on v7x).
    wqkv_kwargs = dict(pipeline_mode=pl.Buffered(wqkv_buffers)) if wqkv_buffers > 2 else {}

    in_specs = [
        pl.BlockSpec((BS, D),          lambda l, i: (0, 0)),             # x (resident)
        pl.BlockSpec((seq, seq),       lambda l, i: (0, 0)),             # additive mask
        pl.BlockSpec((1, 1, D),        lambda l, i: (l, 0, 0)),          # ln1 w
        pl.BlockSpec((1, 1, D),        lambda l, i: (l, 0, 0)),          # ln1 b
        pl.BlockSpec((1, D, 3 * Dh),   lambda l, i: (l, 0, 0), **wqkv_kwargs),  # qkv w
        pl.BlockSpec((1, 1, 3 * Dh),   lambda l, i: (l, 0, 0)),          # qkv b
        pl.BlockSpec((1, Dh, D),       lambda l, i: (l, 0, 0)),          # out-proj w
        pl.BlockSpec((1, 1, D),        lambda l, i: (l, 0, 0)),          # out-proj b
        pl.BlockSpec((1, 1, D),        lambda l, i: (l, 0, 0)),          # ln2 w
        pl.BlockSpec((1, 1, D),        lambda l, i: (l, 0, 0)),          # ln2 b
        pl.BlockSpec((1, D, mlp_tile), lambda l, i: (l, 0, i)),          # fc1 w tile
        pl.BlockSpec((1, 1, mlp_tile), lambda l, i: (l, 0, i)),          # fc1 b tile
        pl.BlockSpec((1, mlp_tile, D), lambda l, i: (l, i, 0)),          # fc2 w tile
        pl.BlockSpec((1, 1, D),        lambda l, i: (l, 0, 0)),          # fc2 b
        pl.BlockSpec((1, D),           lambda l, i: (0, 0)),             # final ln w
        pl.BlockSpec((1, D),           lambda l, i: (0, 0)),             # final ln b
    ]
    out_spec = pl.BlockSpec((BS, D), lambda l, i: (0, 0))

    return pl.pallas_call(
        kern,
        out_shape=jax.ShapeDtypeStruct((BS, D), jnp.float32),
        grid=(L, NI),
        in_specs=in_specs,
        out_specs=out_spec,
        scratch_shapes=[
            pltpu.VMEM((BS, D), jnp.float32),                             # residual stream
            pltpu.VMEM((BS, D), jnp.bfloat16),                            # LN2 out (fc1 in)
            pltpu.VMEM((BS, D), jnp.float32),                             # fc2 accumulator
            pltpu.VMEM((batch * num_heads, seq, head_dim), jnp.bfloat16), # q heads
            pltpu.VMEM((batch * num_heads, seq, head_dim), jnp.bfloat16), # k heads
            pltpu.VMEM((batch * num_heads, seq, head_dim), jnp.bfloat16), # v heads
            pltpu.VMEM((BS, Dh), jnp.bfloat16),                           # concat context
        ],
        compiler_params=pltpu.CompilerParams(
            # Both axes carry state (residual stream / mlp accumulator) -> "arbitrary".
            # No batch-parallel axis: avoids duplicated weight DMA across v7x megacores.
            dimension_semantics=("arbitrary", "arbitrary"),
            vmem_limit_bytes=vmem_limit_bytes),
    )(x_flat, mask,
      layers['ln1w'], layers['ln1b'],
      layers['wqkv'], layers['bqkv'], layers['wo'], layers['bo'],
      layers['ln2w'], layers['ln2b'],
      layers['w1'], layers['b1'], layers['w2'], layers['b2'],
      final_ln_w, final_ln_b)


# ---------------------------------------------------------------------------
# Model: parameter init (stacked per-layer, bf16 matmul weights) + forward
# ---------------------------------------------------------------------------
def init_params(key, *, vocab_size, max_pos, embed_dim, intermediate_size,
                num_heads, head_dim, num_layers):
    D, I, Dh, L = embed_dim, intermediate_size, num_heads * head_dim, num_layers

    def nrm(k, shape, scale=0.02):
        return scale * jax.random.normal(k, shape, dtype=jnp.float32)

    keys = jax.random.split(key, 17)

    # fused QKV params [Wq | Wk | Wv], stored (in, out); the softmax 1/sqrt(head_dim)
    # scale is folded into the Wq columns AND bq so the kernel does no Q scaling.
    wqkv = nrm(keys[7], (L, D, 3 * Dh))
    bqkv = nrm(keys[8], (L, 1, 3 * Dh), 0.1)
    inv_sqrt_hd = 1.0 / (head_dim ** 0.5)
    wqkv = wqkv.at[:, :, :Dh].multiply(inv_sqrt_hd)
    bqkv = bqkv.at[:, :, :Dh].multiply(inv_sqrt_hd)

    bf16 = jnp.bfloat16
    return {
        'token_embedding': nrm(keys[0], (vocab_size, D)),
        'position_embeds': nrm(keys[1], (1, max_pos, D)),
        'final_ln_w': 1.0 + nrm(keys[2], (1, D), 0.1),
        'final_ln_b': nrm(keys[3], (1, D), 0.1),
        'text_projection': nrm(keys[4], (D, D)),              # stored (in, out)
        'layers': {                                            # stacked along L
            'ln1w': 1.0 + nrm(keys[5], (L, 1, D), 0.1),
            'ln1b': nrm(keys[6], (L, 1, D), 0.1),
            'wqkv': wqkv.astype(bf16),
            'bqkv': bqkv,
            'wo':   nrm(keys[9], (L, Dh, D)).astype(bf16),
            'bo':   nrm(keys[10], (L, 1, D), 0.1),
            'ln2w': 1.0 + nrm(keys[11], (L, 1, D), 0.1),
            'ln2b': nrm(keys[12], (L, 1, D), 0.1),
            'w1':   nrm(keys[13], (L, D, I)).astype(bf16),
            'b1':   nrm(keys[14], (L, 1, I), 0.1),
            'w2':   nrm(keys[15], (L, I, D)).astype(bf16),
            'b2':   nrm(keys[16], (L, 1, D), 0.1),
        },
    }


def sdxl_text_encoder_2(input_ids, params, *, num_heads, head_dim, mlp_tile,
                        seq_pad=8, **kernel_kwargs):
    B, S = input_ids.shape
    # token + position embedding (JAX glue: gather)
    embeds = params['token_embedding'][input_ids] + params['position_embeds'][0, :S]
    embeds = embeds.astype(jnp.float32)

    # Pad sequence length: seq_pad=8 minimizes MXU work (v5e, compute-bound);
    # seq_pad=128 gives lane-dense (S,S) score tiles (v6e/v7x, HBM-bound).
    S_pad = _round_up(S, seq_pad)
    if S_pad != S:
        embeds = jnp.pad(embeds, ((0, 0), (0, S_pad - S), (0, 0)))

    # causal (-inf strictly above diagonal) + padded-key-column additive mask;
    # every row keeps >=1 valid column, so softmax never sees an all -inf row.
    idx = jnp.arange(S_pad)
    banned = (idx[None, :] > idx[:, None]) | (idx[None, :] >= S)
    mask = jnp.where(banned, -jnp.inf, 0.0).astype(jnp.float32)

    # fold batch into the matmul M dimension: (B, S_pad, D) -> (B*S_pad, D)
    x_flat = embeds.reshape(B * S_pad, -1)

    hidden = clip_encoder_stack(x_flat, mask, params['layers'],
                                params['final_ln_w'], params['final_ln_b'],
                                batch=B, seq=S_pad,
                                num_heads=num_heads, head_dim=head_dim,
                                mlp_tile=mlp_tile, **kernel_kwargs)
    hidden = hidden.reshape(B, S_pad, -1)[:, :S]               # drop padded rows

    # pooled token = position of max token id (EOS for the CLIP tokenizer) — JAX gather
    # TODO(synk): matches the reference's argmax(input_ids) heuristic; not robust to
    # tokenizers where EOS is not the largest id.
    pool_idx = jnp.argmax(input_ids.astype(jnp.int32), axis=-1)
    pooled = hidden[jnp.arange(B), pool_idx]                    # (B, D)

    # text projection: a (B, D) @ (D, D) matmul is too small to benefit from a kernel.
    return pooled @ params['text_projection']


# ---------------------------------------------------------------------------
if __name__ == "__main__":
    # Small shapes consistent with the module structure
    # (real SDXL: D=1280, I=5120, H=20, hd=64, L=32, S=77, vocab=49408;
    #  knobs: mlp_tile=1280 & wqkv_buffers=3 & seq_pad=128 on v6e,
    #         mlp_tile=640 & seq_pad=128 on v7x, mlp_tile=1280 & seq_pad=8 on v5e).
    B, S = 2, 8
    D, I = 128, 256
    H, HD = 2, 64            # H * HD == D
    N_LAYERS = 2
    VOCAB = 512
    MLP_TILE = 128           # I is streamed through the grid in tiles of this size

    key = jax.random.PRNGKey(0)
    pkey, ikey = jax.random.split(key)
    params = init_params(pkey, vocab_size=VOCAB, max_pos=S, embed_dim=D,
                         intermediate_size=I, num_heads=H, head_dim=HD,
                         num_layers=N_LAYERS)
    input_ids = jax.random.randint(ikey, (B, S), 0, VOCAB, dtype=jnp.int32)

    fwd = jax.jit(functools.partial(sdxl_text_encoder_2,
                                    num_heads=H, head_dim=HD, mlp_tile=MLP_TILE))
    out = fwd(input_ids, params)
    out = jax.block_until_ready(out)
    assert out.shape == (B, D) and out.dtype == jnp.float32
    assert bool(jnp.all(jnp.isfinite(out)))
    print("KERNEL_OK")
</pallas_src>

<mosaic_0001>
module attributes {stable_mosaic.version = 11 : i64} {
  func.func @encoder_stack_kernel(%arg0: i32, %arg1: i32, %arg2: memref<16x128xf32, #tpu.memory_space<vmem>>, %arg3: memref<8x8xf32, #tpu.memory_space<vmem>>, %arg4: memref<1x1x128xf32, #tpu.memory_space<vmem>>, %arg5: memref<1x1x128xf32, #tpu.memory_space<vmem>>, %arg6: memref<1x128x384xbf16, #tpu.memory_space<vmem>>, %arg7: memref<1x1x384xf32, #tpu.memory_space<vmem>>, %arg8: memref<1x128x128xbf16, #tpu.memory_space<vmem>>, %arg9: memref<1x1x128xf32, #tpu.memory_space<vmem>>, %arg10: memref<1x1x128xf32, #tpu.memory_space<vmem>>, %arg11: memref<1x1x128xf32, #tpu.memory_space<vmem>>, %arg12: memref<1x128x128xbf16, #tpu.memory_space<vmem>>, %arg13: memref<1x1x128xf32, #tpu.memory_space<vmem>>, %arg14: memref<1x128x128xbf16, #tpu.memory_space<vmem>>, %arg15: memref<1x1x128xf32, #tpu.memory_space<vmem>>, %arg16: memref<1x128xf32, #tpu.memory_space<vmem>>, %arg17: memref<1x128xf32, #tpu.memory_space<vmem>>, %arg18: memref<16x128xf32, #tpu.memory_space<vmem>>, %arg19: memref<16x128xf32, #tpu.memory_space<vmem>>, %arg20: memref<16x128xbf16, #tpu.memory_space<vmem>>, %arg21: memref<16x128xf32, #tpu.memory_space<vmem>>, %arg22: memref<4x8x64xbf16, #tpu.memory_space<vmem>>, %arg23: memref<4x8x64xbf16, #tpu.memory_space<vmem>>, %arg24: memref<4x8x64xbf16, #tpu.memory_space<vmem>>, %arg25: memref<16x128xbf16, #tpu.memory_space<vmem>>) attributes {dimension_semantics = [#tpu.dimension_semantics<arbitrary>, #tpu.dimension_semantics<arbitrary>], iteration_bounds = array<i64: 2, 2>, scalar_prefetch = 0 : i64, scratch_operands = 7 : i64, tpu.core_type = #tpu.core_type<tc>, window_params = [{pipeline_mode = #tpu.pipeline_mode<synchronous>, transform_indices = @transform_0, window_bounds = array<i64: 16, 128>}, {pipeline_mode = #tpu.pipeline_mode<synchronous>, transform_indices = @transform_1, window_bounds = array<i64: 8, 8>}, {transform_indices = @transform_2, window_bounds = array<i64: 1, 1, 128>}, {transform_indices = @transform_3, window_bounds = array<i64: 1, 1, 128>}, {transform_indices = @transform_4, window_bounds = array<i64: 1, 128, 384>}, {transform_indices = @transform_5, window_bounds = array<i64: 1, 1, 384>}, {transform_indices = @transform_6, window_bounds = array<i64: 1, 128, 128>}, {transform_indices = @transform_7, window_bounds = array<i64: 1, 1, 128>}, {transform_indices = @transform_8, window_bounds = array<i64: 1, 1, 128>}, {transform_indices = @transform_9, window_bounds = array<i64: 1, 1, 128>}, {transform_indices = @transform_10, window_bounds = array<i64: 1, 128, 128>}, {transform_indices = @transform_11, window_bounds = array<i64: 1, 1, 128>}, {transform_indices = @transform_12, window_bounds = array<i64: 1, 128, 128>}, {transform_indices = @transform_13, window_bounds = array<i64: 1, 1, 128>}, {pipeline_mode = #tpu.pipeline_mode<synchronous>, transform_indices = @transform_14, window_bounds = array<i64: 1, 128>}, {pipeline_mode = #tpu.pipeline_mode<synchronous>, transform_indices = @transform_15, window_bounds = array<i64: 1, 128>}, {pipeline_mode = #tpu.pipeline_mode<synchronous>, transform_indices = @transform_16, window_bounds = array<i64: 16, 128>}]} {
    %c0_i32 = arith.constant 0 : i32
    %0 = arith.cmpi eq, %arg1, %c0_i32 : i32
    %1 = arith.extui %0 : i1 to i32
    %c0_i32_0 = arith.constant 0 : i32
    %2 = arith.cmpi ne, %1, %c0_i32_0 : i32
    scf.if %2 {
      %c0_i32_20 = arith.constant 0 : i32
      %29 = arith.cmpi eq, %arg0, %c0_i32_20 : i32
      %30 = arith.extui %29 : i1 to i32
      %c0_i32_21 = arith.constant 0 : i32
      %31 = arith.cmpi ne, %30, %c0_i32_21 : i32
      scf.if %31 {
        %c0_123 = arith.constant 0 : index
        %c0_124 = arith.constant 0 : index
        %203 = vector.load %arg2[%c0_123, %c0_124] : memref<16x128xf32, #tpu.memory_space<vmem>>, vector<16x128xf32>
        %c0_125 = arith.constant 0 : index
        %c0_126 = arith.constant 0 : index
        %204 = vector.load %arg19[%c0_125, %c0_126] : memref<16x128xf32, #tpu.memory_space<vmem>>, vector<16x128xf32>
        tpu.vector_store %arg19[%c0_125, %c0_126], %203 {strides = array<i32>} : memref<16x128xf32, #tpu.memory_space<vmem>>, vector<16x128xf32>,
      } else {
      }
      %c0_22 = arith.constant 0 : index
      %c0_23 = arith.constant 0 : index
      %32 = vector.load %arg19[%c0_22, %c0_23] : memref<16x128xf32, #tpu.memory_space<vmem>>, vector<16x128xf32>
      %c0_24 = arith.constant 0 : index
      %c0_25 = arith.constant 0 : index
      %c0_26 = arith.constant 0 : index
      %33 = vector.load %arg4[%c0_24, %c0_25, %c0_26] : memref<1x1x128xf32, #tpu.memory_space<vmem>>, vector<1x1x128xf32>
      %34 = vector.shape_cast %33 : vector<1x1x128xf32> to vector<1x128xf32>
      %c0_27 = arith.constant 0 : index
      %c0_28 = arith.constant 0 : index
      %c0_29 = arith.constant 0 : index
      %35 = vector.load %arg5[%c0_27, %c0_28, %c0_29] : memref<1x1x128xf32, #tpu.memory_space<vmem>>, vector<1x1x128xf32>
      %36 = vector.shape_cast %35 : vector<1x1x128xf32> to vector<1x128xf32>
      %cst_30 = arith.constant dense<0.000000e+00> : vector<16xf32>
      %37 = vector.multi_reduction <add>, %32, %cst_30 [1] : vector<16x128xf32> to vector<16xf32>
      %38 = vector.shape_cast %37 : vector<16xf32> to vector<16x1xf32>
      %cst_31 = arith.constant 1.280000e+02 : f32
      %39 = vector.broadcast %cst_31 : f32 to vector<16x1xf32>
      %40 = arith.divf %38, %39 : vector<16x1xf32>
      %41 = vector.broadcast %40 : vector<16x1xf32> to vector<16x128xf32>
      %42 = arith.subf %32, %41 : vector<16x128xf32>
      %43 = arith.mulf %42, %42 : vector<16x128xf32>
      %cst_32 = arith.constant dense<0.000000e+00> : vector<16xf32>
      %44 = vector.multi_reduction <add>, %43, %cst_32 [1] : vector<16x128xf32> to vector<16xf32>
      %45 = vector.shape_cast %44 : vector<16xf32> to vector<16x1xf32>
      %cst_33 = arith.constant 1.280000e+02 : f32
      %46 = vector.broadcast %cst_33 : f32 to vector<16x1xf32>
      %47 = arith.divf %45, %46 : vector<16x1xf32>
      %48 = vector.broadcast %40 : vector<16x1xf32> to vector<16x128xf32>
      %49 = arith.subf %32, %48 : vector<16x128xf32>
      %cst_34 = arith.constant 9.99999974E-6 : f32
      %50 = vector.broadcast %cst_34 : f32 to vector<16x1xf32>
      %51 = arith.addf %47, %50 : vector<16x1xf32>
      %52 = math.rsqrt %51 : vector<16x1xf32>
      %53 = vector.broadcast %52 : vector<16x1xf32> to vector<16x128xf32>
      %54 = arith.mulf %49, %53 : vector<16x128xf32>
      %55 = vector.broadcast %34 : vector<1x128xf32> to vector<16x128xf32>
      %56 = arith.mulf %54, %55 : vector<16x128xf32>
      %57 = vector.broadcast %36 : vector<1x128xf32> to vector<16x128xf32>
      %58 = arith.addf %56, %57 : vector<16x128xf32>
      %59 = arith.truncf %58 : vector<16x128xf32> to vector<16x128xbf16>
      %c0_35 = arith.constant 0 : index
      %c0_36 = arith.constant 0 : index
      %c0_37 = arith.constant 0 : index
      %60 = vector.load %arg6[%c0_35, %c0_36, %c0_37] : memref<1x128x384xbf16, #tpu.memory_space<vmem>>, vector<1x128x384xbf16>
      %61 = vector.shape_cast %60 : vector<1x128x384xbf16> to vector<128x384xbf16>
      %cst_38 = arith.constant dense<0.000000e+00> : vector<16x384xf32>
      %62 = tpu.matmul %59, %61, %cst_38 {dimension_numbers = #tpu.dot_dimension_numbers<[1], [0], [0], [1], [0, 0, 1, 1], [], []>} : vector<16x128xbf16>, vector<128x384xbf16>, vector<16x384xf32> -> vector<16x384xf32>
      %c0_39 = arith.constant 0 : index
      %c0_40 = arith.constant 0 : index
      %c0_41 = arith.constant 0 : index
      %63 = vector.load %arg7[%c0_39, %c0_40, %c0_41] : memref<1x1x384xf32, #tpu.memory_space<vmem>>, vector<1x1x384xf32>
      %64 = vector.shape_cast %63 : vector<1x1x384xf32> to vector<1x384xf32>
      %65 = vector.broadcast %64 : vector<1x384xf32> to vector<16x384xf32>
      %66 = arith.addf %62, %65 : vector<16x384xf32>
      %67 = vector.extract_strided_slice %66 {offsets = [0, 0], sizes = [8, 64], strides = [1, 1]} : vector<16x384xf32> to vector<8x64xf32>
      %68 = arith.truncf %67 : vector<8x64xf32> to vector<8x64xbf16>
      %c0_42 = arith.constant 0 : index
      %c0_43 = arith.constant 0 : index
      %c0_44 = arith.constant 0 : index
      %69 = vector.load %arg22[%c0_42, %c0_43, %c0_44] : memref<4x8x64xbf16, #tpu.memory_space<vmem>>, vector<1x8x64xbf16>
      %70 = vector.shape_cast %69 : vector<1x8x64xbf16> to vector<8x64xbf16>
      %71 = vector.shape_cast %68 : vector<8x64xbf16> to vector<1x8x64xbf16>
      tpu.vector_store %arg22[%c0_42, %c0_43, %c0_44], %71 {strides = array<i32>} : memref<4x8x64xbf16, #tpu.memory_space<vmem>>, vector<1x8x64xbf16>,
      %72 = vector.extract_strided_slice %66 {offsets = [0, 128], sizes = [8, 64], strides = [1, 1]} : vector<16x384xf32> to vector<8x64xf32>
      %73 = arith.truncf %72 : vector<8x64xf32> to vector<8x64xbf16>
      %c0_45 = arith.constant 0 : index
      %c0_46 = arith.constant 0 : index
      %c0_47 = arith.constant 0 : index
      %74 = vector.load %arg23[%c0_45, %c0_46, %c0_47] : memref<4x8x64xbf16, #tpu.memory_space<vmem>>, vector<1x8x64xbf16>
      %75 = vector.shape_cast %74 : vector<1x8x64xbf16> to vector<8x64xbf16>
      %76 = vector.shape_cast %73 : vector<8x64xbf16> to vector<1x8x64xbf16>
      tpu.vector_store %arg23[%c0_45, %c0_46, %c0_47], %76 {strides = array<i32>} : memref<4x8x64xbf16, #tpu.memory_space<vmem>>, vector<1x8x64xbf16>,
      %77 = vector.extract_strided_slice %66 {offsets = [0, 256], sizes = [8, 64], strides = [1, 1]} : vector<16x384xf32> to vector<8x64xf32>
      %78 = arith.truncf %77 : vector<8x64xf32> to vector<8x64xbf16>
      %c0_48 = arith.constant 0 : index
      %c0_49 = arith.constant 0 : index
      %c0_50 = arith.constant 0 : index
      %79 = vector.load %arg24[%c0_48, %c0_49, %c0_50] : memref<4x8x64xbf16, #tpu.memory_space<vmem>>, vector<1x8x64xbf16>
      %80 = vector.shape_cast %79 : vector<1x8x64xbf16> to vector<8x64xbf16>
      %81 = vector.shape_cast %78 : vector<8x64xbf16> to vector<1x8x64xbf16>
      tpu.vector_store %arg24[%c0_48, %c0_49, %c0_50], %81 {strides = array<i32>} : memref<4x8x64xbf16, #tpu.memory_space<vmem>>, vector<1x8x64xbf16>,
      %82 = vector.extract_strided_slice %66 {offsets = [0, 64], sizes = [8, 64], strides = [1, 1]} : vector<16x384xf32> to vector<8x64xf32>
      %83 = arith.truncf %82 : vector<8x64xf32> to vector<8x64xbf16>
      %c1 = arith.constant 1 : index
      %c0_51 = arith.constant 0 : index
      %c0_52 = arith.constant 0 : index
      %84 = vector.load %arg22[%c1, %c0_51, %c0_52] : memref<4x8x64xbf16, #tpu.memory_space<vmem>>, vector<1x8x64xbf16>
      %85 = vector.shape_cast %84 : vector<1x8x64xbf16> to vector<8x64xbf16>
      %86 = vector.shape_cast %83 : vector<8x64xbf16> to vector<1x8x64xbf16>
      tpu.vector_store %arg22[%c1, %c0_51, %c0_52], %86 {strides = array<i32>} : memref<4x8x64xbf16, #tpu.memory_space<vmem>>, vector<1x8x64xbf16>,
      %87 = vector.extract_strided_slice %66 {offsets = [0, 192], sizes = [8, 64], strides = [1, 1]} : vector<16x384xf32> to vector<8x64xf32>
      %88 = arith.truncf %87 : vector<8x64xf32> to vector<8x64xbf16>
      %c1_53 = arith.constant 1 : index
      %c0_54 = arith.constant 0 : index
      %c0_55 = arith.constant 0 : index
      %89 = vector.load %arg23[%c1_53, %c0_54, %c0_55] : memref<4x8x64xbf16, #tpu.memory_space<vmem>>, vector<1x8x64xbf16>
      %90 = vector.shape_cast %89 : vector<1x8x64xbf16> to vector<8x64xbf16>
      %91 = vector.shape_cast %88 : vector<8x64xbf16> to vector<1x8x64xbf16>
      tpu.vector_store %arg23[%c1_53, %c0_54, %c0_55], %91 {strides = array<i32>} : memref<4x8x64xbf16, #tpu.memory_space<vmem>>, vector<1x8x64xbf16>,
      %92 = vector.extract_strided_slice %66 {offsets = [0, 320], sizes = [8, 64], strides = [1, 1]} : vector<16x384xf32> to vector<8x64xf32>
      %93 = arith.truncf %92 : vector<8x64xf32> to vector<8x64xbf16>
      %c1_56 = arith.constant 1 : index
      %c0_57 = arith.constant 0 : index
      %c0_58 = arith.constant 0 : index
      %94 = vector.load %arg24[%c1_56, %c0_57, %c0_58] : memref<4x8x64xbf16, #tpu.memory_space<vmem>>, vector<1x8x64xbf16>
      %95 = vector.shape_cast %94 : vector<1x8x64xbf16> to vector<8x64xbf16>
      %96 = vector.shape_cast %93 : vector<8x64xbf16> to vector<1x8x64xbf16>
      tpu.vector_store %arg24[%c1_56, %c0_57, %c0_58], %96 {strides = array<i32>} : memref<4x8x64xbf16, #tpu.memory_space<vmem>>, vector<1x8x64xbf16>,
      %97 = vector.extract_strided_slice %66 {offsets = [8, 0], sizes = [8, 64], strides = [1, 1]} : vector<16x384xf32> to vector<8x64xf32>
      %98 = arith.truncf %97 : vector<8x64xf32> to vector<8x64xbf16>
      %c2 = arith.constant 2 : index
      %c0_59 = arith.constant 0 : index
      %c0_60 = arith.constant 0 : index
      %99 = vector.load %arg22[%c2, %c0_59, %c0_60] : memref<4x8x64xbf16, #tpu.memory_space<vmem>>, vector<1x8x64xbf16>
      %100 = vector.shape_cast %99 : vector<1x8x64xbf16> to vector<8x64xbf16>
      %101 = vector.shape_cast %98 : vector<8x64xbf16> to vector<1x8x64xbf16>
      tpu.vector_store %arg22[%c2, %c0_59, %c0_60], %101 {strides = array<i32>} : memref<4x8x64xbf16, #tpu.memory_space<vmem>>, vector<1x8x64xbf16>,
      %102 = vector.extract_strided_slice %66 {offsets = [8, 128], sizes = [8, 64], strides = [1, 1]} : vector<16x384xf32> to vector<8x64xf32>
      %103 = arith.truncf %102 : vector<8x64xf32> to vector<8x64xbf16>
      %c2_61 = arith.constant 2 : index
      %c0_62 = arith.constant 0 : index
      %c0_63 = arith.constant 0 : index
      %104 = vector.load %arg23[%c2_61, %c0_62, %c0_63] : memref<4x8x64xbf16, #tpu.memory_space<vmem>>, vector<1x8x64xbf16>
      %105 = vector.shape_cast %104 : vector<1x8x64xbf16> to vector<8x64xbf16>
      %106 = vector.shape_cast %103 : vector<8x64xbf16> to vector<1x8x64xbf16>
      tpu.vector_store %arg23[%c2_61, %c0_62, %c0_63], %106 {strides = array<i32>} : memref<4x8x64xbf16, #tpu.memory_space<vmem>>, vector<1x8x64xbf16>,
      %107 = vector.extract_strided_slice %66 {offsets = [8, 256], sizes = [8, 64], strides = [1, 1]} : vector<16x384xf32> to vector<8x64xf32>
      %108 = arith.truncf %107 : vector<8x64xf32> to vector<8x64xbf16>
      %c2_64 = arith.constant 2 : index
      %c0_65 = arith.constant 0 : index
      %c0_66 = arith.constant 0 : index
      %109 = vector.load %arg24[%c2_64, %c0_65, %c0_66] : memref<4x8x64xbf16, #tpu.memory_space<vmem>>, vector<1x8x64xbf16>
      %110 = vector.shape_cast %109 : vector<1x8x64xbf16> to vector<8x64xbf16>
      %111 = vector.shape_cast %108 : vector<8x64xbf16> to vector<1x8x64xbf16>
      tpu.vector_store %arg24[%c2_64, %c0_65, %c0_66], %111 {strides = array<i32>} : memref<4x8x64xbf16, #tpu.memory_space<vmem>>, vector<1x8x64xbf16>,
      %112 = vector.extract_strided_slice %66 {offsets = [8, 64], sizes = [8, 64], strides = [1, 1]} : vector<16x384xf32> to vector<8x64xf32>
      %113 = arith.truncf %112 : vector<8x64xf32> to vector<8x64xbf16>
      %c3 = arith.constant 3 : index
      %c0_67 = arith.constant 0 : index
      %c0_68 = arith.constant 0 : index
      %114 = vector.load %arg22[%c3, %c0_67, %c0_68] : memref<4x8x64xbf16, #tpu.memory_space<vmem>>, vector<1x8x64xbf16>
      %115 = vector.shape_cast %114 : vector<1x8x64xbf16> to vector<8x64xbf16>
      %116 = vector.shape_cast %113 : vector<8x64xbf16> to vector<1x8x64xbf16>
      tpu.vector_store %arg22[%c3, %c0_67, %c0_68], %116 {strides = array<i32>} : memref<4x8x64xbf16, #tpu.memory_space<vmem>>, vector<1x8x64xbf16>,
      %117 = vector.extract_strided_slice %66 {offsets = [8, 192], sizes = [8, 64], strides = [1, 1]} : vector<16x384xf32> to vector<8x64xf32>
      %118 = arith.truncf %117 : vector<8x64xf32> to vector<8x64xbf16>
      %c3_69 = arith.constant 3 : index
      %c0_70 = arith.constant 0 : index
      %c0_71 = arith.constant 0 : index
      %119 = vector.load %arg23[%c3_69, %c0_70, %c0_71] : memref<4x8x64xbf16, #tpu.memory_space<vmem>>, vector<1x8x64xbf16>
      %120 = vector.shape_cast %119 : vector<1x8x64xbf16> to vector<8x64xbf16>
      %121 = vector.shape_cast %118 : vector<8x64xbf16> to vector<1x8x64xbf16>
      tpu.vector_store %arg23[%c3_69, %c0_70, %c0_71], %121 {strides = array<i32>} : memref<4x8x64xbf16, #tpu.memory_space<vmem>>, vector<1x8x64xbf16>,
      %122 = vector.extract_strided_slice %66 {offsets = [8, 320], sizes = [8, 64], strides = [1, 1]} : vector<16x384xf32> to vector<8x64xf32>
      %123 = arith.truncf %122 : vector<8x64xf32> to vector<8x64xbf16>
      %c3_72 = arith.constant 3 : index
      %c0_73 = arith.constant 0 : index
      %c0_74 = arith.constant 0 : index
      %124 = vector.load %arg24[%c3_72, %c0_73, %c0_74] : memref<4x8x64xbf16, #tpu.memory_space<vmem>>, vector<1x8x64xbf16>
      %125 = vector.shape_cast %124 : vector<1x8x64xbf16> to vector<8x64xbf16>
      %126 = vector.shape_cast %123 : vector<8x64xbf16> to vector<1x8x64xbf16>
      tpu.vector_store %arg24[%c3_72, %c0_73, %c0_74], %126 {strides = array<i32>} : memref<4x8x64xbf16, #tpu.memory_space<vmem>>, vector<1x8x64xbf16>,
      %c0_75 = arith.constant 0 : index
      %c0_76 = arith.constant 0 : index
      %c0_77 = arith.constant 0 : index
      %127 = vector.load %arg22[%c0_75, %c0_76, %c0_77] : memref<4x8x64xbf16, #tpu.memory_space<vmem>>, vector<4x8x64xbf16>
      %c0_78 = arith.constant 0 : index
      %c0_79 = arith.constant 0 : index
      %c0_80 = arith.constant 0 : index
      %128 = vector.load %arg23[%c0_78, %c0_79, %c0_80] : memref<4x8x64xbf16, #tpu.memory_space<vmem>>, vector<4x8x64xbf16>
      %cst_81 = arith.constant dense<0.000000e+00> : vector<4x8x8xf32>
      %129 = tpu.matmul %127, %128, %cst_81 {dimension_numbers = #tpu.dot_dimension_numbers<[2], [2], [1], [1], [0, 0, 0, 1, 1, 1], [0], [0]>} : vector<4x8x64xbf16>, vector<4x8x64xbf16>, vector<4x8x8xf32> -> vector<4x8x8xf32>
      %c0_82 = arith.constant 0 : index
      %c0_83 = arith.constant 0 : index
      %130 = vector.load %arg3[%c0_82, %c0_83] : memref<8x8xf32, #tpu.memory_space<vmem>>, vector<8x8xf32>
      %131 = vector.shape_cast %130 : vector<8x8xf32> to vector<1x8x8xf32>
      %132 = vector.broadcast %131 : vector<1x8x8xf32> to vector<4x8x8xf32>
      %133 = arith.addf %129, %132 : vector<4x8x8xf32>
      %cst_84 = arith.constant dense<0xFF800000> : vector<4x8xf32>
      %134 = vector.multi_reduction <maximumf>, %133, %cst_84 [2] : vector<4x8x8xf32> to vector<4x8xf32>
      %135 = vector.shape_cast %134 : vector<4x8xf32> to vector<4x8x1xf32>
      %136 = vector.broadcast %135 : vector<4x8x1xf32> to vector<4x8x8xf32>
      %137 = arith.subf %133, %136 : vector<4x8x8xf32>
      %138 = math.exp %137 : vector<4x8x8xf32>
      %cst_85 = arith.constant dense<0.000000e+00> : vector<4x8xf32>
      %139 = vector.multi_reduction <add>, %138, %cst_85 [2] : vector<4x8x8xf32> to vector<4x8xf32>
      %140 = vector.shape_cast %139 : vector<4x8xf32> to vector<4x8x1xf32>
      %141 = tpu.reciprocal %140 {approx = true} : vector<4x8x1xf32> -> vector<4x8x1xf32>
      %142 = vector.broadcast %141 : vector<4x8x1xf32> to vector<4x8x8xf32>
      %143 = arith.mulf %138, %142 : vector<4x8x8xf32>
      %144 = arith.truncf %143 : vector<4x8x8xf32> to vector<4x8x8xbf16>
      %c0_86 = arith.constant 0 : index
      %c0_87 = arith.constant 0 : index
      %c0_88 = arith.constant 0 : index
      %145 = vector.load %arg24[%c0_86, %c0_87, %c0_88] : memref<4x8x64xbf16, #tpu.memory_space<vmem>>, vector<4x8x64xbf16>
      %cst_89 = arith.constant dense<0.000000e+00> : vector<4x8x64xf32>
      %146 = tpu.matmul %144, %145, %cst_89 {dimension_numbers = #tpu.dot_dimension_numbers<[2], [1], [1], [2], [0, 0, 0, 1, 1, 2], [0], [0]>} : vector<4x8x8xbf16>, vector<4x8x64xbf16>, vector<4x8x64xf32> -> vector<4x8x64xf32>
      %147 = vector.extract_strided_slice %146 {offsets = [0, 0, 0], sizes = [1, 8, 64], strides = [1, 1, 1]} : vector<4x8x64xf32> to vector<1x8x64xf32>
      %148 = vector.shape_cast %147 : vector<1x8x64xf32> to vector<8x64xf32>
      %149 = arith.truncf %148 : vector<8x64xf32> to vector<8x64xbf16>
      %c0_90 = arith.constant 0 : index
      %c0_91 = arith.constant 0 : index
      %150 = vector.load %arg25[%c0_90, %c0_91] : memref<16x128xbf16, #tpu.memory_space<vmem>>, vector<8x64xbf16>
      tpu.vector_store %arg25[%c0_90, %c0_91], %149 {strides = array<i32>} : memref<16x128xbf16, #tpu.memory_space<vmem>>, vector<8x64xbf16>,
      %151 = vector.extract_strided_slice %146 {offsets = [1, 0, 0], sizes = [1, 8, 64], strides = [1, 1, 1]} : vector<4x8x64xf32> to vector<1x8x64xf32>
      %152 = vector.shape_cast %151 : vector<1x8x64xf32> to vector<8x64xf32>
      %153 = arith.truncf %152 : vector<8x64xf32> to vector<8x64xbf16>
      %c0_92 = arith.constant 0 : index
      %c64 = arith.constant 64 : index
      %154 = vector.load %arg25[%c0_92, %c64] : memref<16x128xbf16, #tpu.memory_space<vmem>>, vector<8x64xbf16>
      tpu.vector_store %arg25[%c0_92, %c64], %153 {strides = array<i32>} : memref<16x128xbf16, #tpu.memory_space<vmem>>, vector<8x64xbf16>,
      %155 = vector.extract_strided_slice %146 {offsets = [2, 0, 0], sizes = [1, 8, 64], strides = [1, 1, 1]} : vector<4x8x64xf32> to vector<1x8x64xf32>
      %156 = vector.shape_cast %155 : vector<1x8x64xf32> to vector<8x64xf32>
      %157 = arith.truncf %156 : vector<8x64xf32> to vector<8x64xbf16>
      %c8 = arith.constant 8 : index
      %c0_93 = arith.constant 0 : index
      %158 = vector.load %arg25[%c8, %c0_93] : memref<16x128xbf16, #tpu.memory_space<vmem>>, vector<8x64xbf16>
      tpu.vector_store %arg25[%c8, %c0_93], %157 {strides = array<i32>} : memref<16x128xbf16, #tpu.memory_space<vmem>>, vector<8x64xbf16>,
      %159 = vector.extract_strided_slice %146 {offsets = [3, 0, 0], sizes = [1, 8, 64], strides = [1, 1, 1]} : vector<4x8x64xf32> to vector<1x8x64xf32>
      %160 = vector.shape_cast %159 : vector<1x8x64xf32> to vector<8x64xf32>
      %161 = arith.truncf %160 : vector<8x64xf32> to vector<8x64xbf16>
      %c8_94 = arith.constant 8 : index
      %c64_95 = arith.constant 64 : index
      %162 = vector.load %arg25[%c8_94, %c64_95] : memref<16x128xbf16, #tpu.memory_space<vmem>>, vector<8x64xbf16>
      tpu.vector_store %arg25[%c8_94, %c64_95], %161 {strides = array<i32>} : memref<16x128xbf16, #tpu.memory_space<vmem>>, vector<8x64xbf16>,
      %c0_96 = arith.constant 0 : index
      %c0_97 = arith.constant 0 : index
      %163 = vector.load %arg25[%c0_96, %c0_97] : memref<16x128xbf16, #tpu.memory_space<vmem>>, vector<16x128xbf16>
      %c0_98 = arith.constant 0 : index
      %c0_99 = arith.constant 0 : index
      %c0_100 = arith.constant 0 : index
      %164 = vector.load %arg8[%c0_98, %c0_99, %c0_100] : memref<1x128x128xbf16, #tpu.memory_space<vmem>>, vector<1x128x128xbf16>
      %165 = vector.shape_cast %164 : vector<1x128x128xbf16> to vector<128x128xbf16>
      %cst_101 = arith.constant dense<0.000000e+00> : vector<16x128xf32>
      %166 = tpu.matmul %163, %165, %cst_101 {dimension_numbers = #tpu.dot_dimension_numbers<[1], [0], [0], [1], [0, 0, 1, 1], [], []>} : vector<16x128xbf16>, vector<128x128xbf16>, vector<16x128xf32> -> vector<16x128xf32>
      %c0_102 = arith.constant 0 : index
      %c0_103 = arith.constant 0 : index
      %c0_104 = arith.constant 0 : index
      %167 = vector.load %arg9[%c0_102, %c0_103, %c0_104] : memref<1x1x128xf32, #tpu.memory_space<vmem>>, vector<1x1x128xf32>
      %168 = vector.shape_cast %167 : vector<1x1x128xf32> to vector<1x128xf32>
      %169 = vector.broadcast %168 : vector<1x128xf32> to vector<16x128xf32>
      %170 = arith.addf %166, %169 : vector<16x128xf32>
      %171 = arith.addf %32, %170 : vector<16x128xf32>
      %c0_105 = arith.constant 0 : index
      %c0_106 = arith.constant 0 : index
      %172 = vector.load %arg19[%c0_105, %c0_106] : memref<16x128xf32, #tpu.memory_space<vmem>>, vector<16x128xf32>
      tpu.vector_store %arg19[%c0_105, %c0_106], %171 {strides = array<i32>} : memref<16x128xf32, #tpu.memory_space<vmem>>, vector<16x128xf32>,
      %c0_107 = arith.constant 0 : index
      %c0_108 = arith.constant 0 : index
      %c0_109 = arith.constant 0 : index
      %173 = vector.load %arg10[%c0_107, %c0_108, %c0_109] : memref<1x1x128xf32, #tpu.memory_space<vmem>>, vector<1x1x128xf32>
      %174 = vector.shape_cast %173 : vector<1x1x128xf32> to vector<1x128xf32>
      %c0_110 = arith.constant 0 : index
      %c0_111 = arith.constant 0 : index
      %c0_112 = arith.constant 0 : index
      %175 = vector.load %arg11[%c0_110, %c0_111, %c0_112] : memref<1x1x128xf32, #tpu.memory_space<vmem>>, vector<1x1x128xf32>
      %176 = vector.shape_cast %175 : vector<1x1x128xf32> to vector<1x128xf32>
      %cst_113 = arith.constant dense<0.000000e+00> : vector<16xf32>
      %177 = vector.multi_reduction <add>, %171, %cst_113 [1] : vector<16x128xf32> to vector<16xf32>
      %178 = vector.shape_cast %177 : vector<16xf32> to vector<16x1xf32>
      %cst_114 = arith.constant 1.280000e+02 : f32
      %179 = vector.broadcast %cst_114 : f32 to vector<16x1xf32>
      %180 = arith.divf %178, %179 : vector<16x1xf32>
      %181 = vector.broadcast %180 : vector<16x1xf32> to vector<16x128xf32>
      %182 = arith.subf %171, %181 : vector<16x128xf32>
      %183 = arith.mulf %182, %182 : vector<16x128xf32>
      %cst_115 = arith.constant dense<0.000000e+00> : vector<16xf32>
      %184 = vector.multi_reduction <add>, %183, %cst_115 [1] : vector<16x128xf32> to vector<16xf32>
      %185 = vector.shape_cast %184 : vector<16xf32> to vector<16x1xf32>
      %cst_116 = arith.constant 1.280000e+02 : f32
      %186 = vector.broadcast %cst_116 : f32 to vector<16x1xf32>
      %187 = arith.divf %185, %186 : vector<16x1xf32>
      %188 = vector.broadcast %180 : vector<16x1xf32> to vector<16x128xf32>
      %189 = arith.subf %171, %188 : vector<16x128xf32>
      %cst_117 = arith.constant 9.99999974E-6 : f32
      %190 = vector.broadcast %cst_117 : f32 to vector<16x1xf32>
      %191 = arith.addf %187, %190 : vector<16x1xf32>
      %192 = math.rsqrt %191 : vector<16x1xf32>
      %193 = vector.broadcast %192 : vector<16x1xf32> to vector<16x128xf32>
      %194 = arith.mulf %189, %193 : vector<16x128xf32>
      %195 = vector.broadcast %174 : vector<1x128xf32> to vector<16x128xf32>
      %196 = arith.mulf %194, %195 : vector<16x128xf32>
      %197 = vector.broadcast %176 : vector<1x128xf32> to vector<16x128xf32>
      %198 = arith.addf %196, %197 : vector<16x128xf32>
      %199 = arith.truncf %198 : vector<16x128xf32> to vector<16x128xbf16>
      %c0_118 = arith.constant 0 : index
      %c0_119 = arith.constant 0 : index
      %200 = vector.load %arg20[%c0_118, %c0_119] : memref<16x128xbf16, #tpu.memory_space<vmem>>, vector<16x128xbf16>
      tpu.vector_store %arg20[%c0_118, %c0_119], %199 {strides = array<i32>} : memref<16x128xbf16, #tpu.memory_space<vmem>>, vector<16x128xbf16>,
      %cst_120 = arith.constant 0.000000e+00 : f32
      %201 = vector.broadcast %cst_120 : f32 to vector<16x128xf32>
      %c0_121 = arith.constant 0 : index
      %c0_122 = arith.constant 0 : index
      %202 = vector.load %arg21[%c0_121, %c0_122] : memref<16x128xf32, #tpu.memory_space<vmem>>, vector<16x128xf32>
      tpu.vector_store %arg21[%c0_121, %c0_122], %201 {strides = array<i32>} : memref<16x128xf32, #tpu.memory_space<vmem>>, vector<16x128xf32>,
    } else {
    }
    %c0 = arith.constant 0 : index
    %c0_1 = arith.constant 0 : index
    %3 = vector.load %arg20[%c0, %c0_1] : memref<16x128xbf16, #tpu.memory_space<vmem>>, vector<16x128xbf16>
    %c0_2 = arith.constant 0 : index
    %c0_3 = arith.constant 0 : index
    %c0_4 = arith.constant 0 : index
    %4 = vector.load %arg12[%c0_2, %c0_3, %c0_4] : memref<1x128x128xbf16, #tpu.memory_space<vmem>>, vector<1x128x128xbf16>
    %5 = vector.shape_cast %4 : vector<1x128x128xbf16> to vector<128x128xbf16>
    %cst = arith.constant dense<0.000000e+00> : vector<16x128xf32>
    %6 = tpu.matmul %3, %5, %cst {dimension_numbers = #tpu.dot_dimension_numbers<[1], [0], [0], [1], [0, 0, 1, 1], [], []>} : vector<16x128xbf16>, vector<128x128xbf16>, vector<16x128xf32> -> vector<16x128xf32>
    %c0_5 = arith.constant 0 : index
    %c0_6 = arith.constant 0 : index
    %c0_7 = arith.constant 0 : index
    %7 = vector.load %arg13[%c0_5, %c0_6, %c0_7] : memref<1x1x128xf32, #tpu.memory_space<vmem>>, vector<1x1x128xf32>
    %8 = vector.shape_cast %7 : vector<1x1x128xf32> to vector<1x128xf32>
    %9 = vector.broadcast %8 : vector<1x128xf32> to vector<16x128xf32>
    %10 = arith.addf %6, %9 : vector<16x128xf32>
    %cst_8 = arith.constant 5.000000e-01 : f32
    %11 = vector.broadcast %cst_8 : f32 to vector<16x128xf32>
    %12 = arith.mulf %11, %10 : vector<16x128xf32>
    %cst_9 = arith.constant 0.707106769 : f32
    %13 = vector.broadcast %cst_9 : f32 to vector<16x128xf32>
    %14 = arith.mulf %10, %13 : vector<16x128xf32>
    %15 = math.erf %14 : vector<16x128xf32>
    %cst_10 = arith.constant 1.000000e+00 : f32
    %16 = vector.broadcast %cst_10 : f32 to vector<16x128xf32>
    %17 = arith.addf %16, %15 : vector<16x128xf32>
    %18 = arith.mulf %12, %17 : vector<16x128xf32>
    %c0_11 = arith.constant 0 : index
    %c0_12 = arith.constant 0 : index
    %19 = vector.load %arg21[%c0_11, %c0_12] : memref<16x128xf32, #tpu.memory_space<vmem>>, vector<16x128xf32>
    %20 = arith.truncf %18 : vector<16x128xf32> to vector<16x128xbf16>
    %c0_13 = arith.constant 0 : index
    %c0_14 = arith.constant 0 : index
    %c0_15 = arith.constant 0 : index
    %21 = vector.load %arg14[%c0_13, %c0_14, %c0_15] : memref<1x128x128xbf16, #tpu.memory_space<vmem>>, vector<1x128x128xbf16>
    %22 = vector.shape_cast %21 : vector<1x128x128xbf16> to vector<128x128xbf16>
    %cst_16 = arith.constant dense<0.000000e+00> : vector<16x128xf32>
    %23 = tpu.matmul %20, %22, %cst_16 {dimension_numbers = #tpu.dot_dimension_numbers<[1], [0], [0], [1], [0, 0, 1, 1], [], []>} : vector<16x128xbf16>, vector<128x128xbf16>, vector<16x128xf32> -> vector<16x128xf32>
    %24 = arith.addf %19, %23 : vector<16x128xf32>
    %c0_17 = arith.constant 0 : index
    %c0_18 = arith.constant 0 : index
    %25 = vector.load %arg21[%c0_17, %c0_18] : memref<16x128xf32, #tpu.memory_space<vmem>>, vector<16x128xf32>
    tpu.vector_store %arg21[%c0_17, %c0_18], %24 {strides = array<i32>} : memref<16x128xf32, #tpu.memory_space<vmem>>, vector<16x128xf32>,
    %c1_i32 = arith.constant 1 : i32
    %26 = arith.cmpi eq, %arg1, %c1_i32 : i32
    %27 = arith.extui %26 : i1 to i32
    %c0_i32_19 = arith.constant 0 : i32
    %28 = arith.cmpi ne, %27, %c0_i32_19 : i32
    scf.if %28 {
      %c0_20 = arith.constant 0 : index
      %c0_21 = arith.constant 0 : index
      %29 = vector.load %arg19[%c0_20, %c0_21] : memref<16x128xf32, #tpu.memory_space<vmem>>, vector<16x128xf32>
      %c0_22 = arith.constant 0 : index
      %c0_23 = arith.constant 0 : index
      %30 = vector.load %arg21[%c0_22, %c0_23] : memref<16x128xf32, #tpu.memory_space<vmem>>, vector<16x128xf32>
      %31 = arith.addf %29, %30 : vector<16x128xf32>
      %c0_24 = arith.constant 0 : index
      %c0_25 = arith.constant 0 : index
      %c0_26 = arith.constant 0 : index
      %32 = vector.load %arg15[%c0_24, %c0_25, %c0_26] : memref<1x1x128xf32, #tpu.memory_space<vmem>>, vector<1x1x128xf32>
      %33 = vector.shape_cast %32 : vector<1x1x128xf32> to vector<1x128xf32>
      %34 = vector.broadcast %33 : vector<1x128xf32> to vector<16x128xf32>
      %35 = arith.addf %31, %34 : vector<16x128xf32>
      %c0_27 = arith.constant 0 : index
      %c0_28 = arith.constant 0 : index
      %36 = vector.load %arg19[%c0_27, %c0_28] : memref<16x128xf32, #tpu.memory_space<vmem>>, vector<16x128xf32>
      tpu.vector_store %arg19[%c0_27, %c0_28], %35 {strides = array<i32>} : memref<16x128xf32, #tpu.memory_space<vmem>>, vector<16x128xf32>,
      %c1_i32_29 = arith.constant 1 : i32
      %37 = arith.cmpi eq, %arg0, %c1_i32_29 : i32
      %38 = arith.extui %37 : i1 to i32
      %c0_i32_30 = arith.constant 0 : i32
      %39 = arith.cmpi ne, %38, %c0_i32_30 : i32
      scf.if %39 {
        %c0_31 = arith.constant 0 : index
        %c0_32 = arith.constant 0 : index
        %40 = vector.load %arg16[%c0_31, %c0_32] : memref<1x128xf32, #tpu.memory_space<vmem>>, vector<1x128xf32>
        %c0_33 = arith.constant 0 : index
        %c0_34 = arith.constant 0 : index
        %41 = vector.load %arg17[%c0_33, %c0_34] : memref<1x128xf32, #tpu.memory_space<vmem>>, vector<1x128xf32>
        %cst_35 = arith.constant dense<0.000000e+00> : vector<16xf32>
        %42 = vector.multi_reduction <add>, %35, %cst_35 [1] : vector<16x128xf32> to vector<16xf32>
        %43 = vector.shape_cast %42 : vector<16xf32> to vector<16x1xf32>
        %cst_36 = arith.constant 1.280000e+02 : f32
        %44 = vector.broadcast %cst_36 : f32 to vector<16x1xf32>
        %45 = arith.divf %43, %44 : vector<16x1xf32>
        %46 = vector.broadcast %45 : vector<16x1xf32> to vector<16x128xf32>
        %47 = arith.subf %35, %46 : vector<16x128xf32>
        %48 = arith.mulf %47, %47 : vector<16x128xf32>
        %cst_37 = arith.constant dense<0.000000e+00> : vector<16xf32>
        %49 = vector.multi_reduction <add>, %48, %cst_37 [1] : vector<16x128xf32> to vector<16xf32>
        %50 = vector.shape_cast %49 : vector<16xf32> to vector<16x1xf32>
        %cst_38 = arith.constant 1.280000e+02 : f32
        %51 = vector.broadcast %cst_38 : f32 to vector<16x1xf32>
        %52 = arith.divf %50, %51 : vector<16x1xf32>
        %53 = vector.broadcast %45 : vector<16x1xf32> to vector<16x128xf32>
        %54 = arith.subf %35, %53 : vector<16x128xf32>
        %cst_39 = arith.constant 9.99999974E-6 : f32
        %55 = vector.broadcast %cst_39 : f32 to vector<16x1xf32>
        %56 = arith.addf %52, %55 : vector<16x1xf32>
        %57 = math.rsqrt %56 : vector<16x1xf32>
        %58 = vector.broadcast %57 : vector<16x1xf32> to vector<16x128xf32>
        %59 = arith.mulf %54, %58 : vector<16x128xf32>
        %60 = vector.broadcast %40 : vector<1x128xf32> to vector<16x128xf32>
        %61 = arith.mulf %59, %60 : vector<16x128xf32>
        %62 = vector.broadcast %41 : vector<1x128xf32> to vector<16x128xf32>
        %63 = arith.addf %61, %62 : vector<16x128xf32>
        %c0_40 = arith.constant 0 : index
        %c0_41 = arith.constant 0 : index
        %64 = vector.load %arg18[%c0_40, %c0_41] : memref<16x128xf32, #tpu.memory_space<vmem>>, vector<16x128xf32>
        tpu.vector_store %arg18[%c0_40, %c0_41], %63 {strides = array<i32>} : memref<16x128xf32, #tpu.memory_space<vmem>>, vector<16x128xf32>,
      } else {
      }
    } else {
    }
    return
  }
  func.func @transform_0(%arg0: i32, %arg1: i32) -> (i32, i32) {
    %c0_i32 = arith.constant 0 : i32
    %c0_i32_0 = arith.constant 0 : i32
    %c0_i32_1 = arith.constant 0 : i32
    return %c0_i32, %c0_i32_0 : i32, i32
  }
  func.func @transform_1(%arg0: i32, %arg1: i32) -> (i32, i32) {
    %c0_i32 = arith.constant 0 : i32
    %c0_i32_0 = arith.constant 0 : i32
    %c0_i32_1 = arith.constant 0 : i32
    return %c0_i32, %c0_i32_0 : i32, i32
  }
  func.func @transform_2(%arg0: i32, %arg1: i32) -> (i32, i32, i32) {
    %c0_i32 = arith.constant 0 : i32
    %c0_i32_0 = arith.constant 0 : i32
    %c0_i32_1 = arith.constant 0 : i32
    return %arg0, %c0_i32, %c0_i32_0 : i32, i32, i32
  }
  func.func @transform_3(%arg0: i32, %arg1: i32) -> (i32, i32, i32) {
    %c0_i32 = arith.constant 0 : i32
    %c0_i32_0 = arith.constant 0 : i32
    %c0_i32_1 = arith.constant 0 : i32
    return %arg0, %c0_i32, %c0_i32_0 : i32, i32, i32
  }
  func.func @transform_4(%arg0: i32, %arg1: i32) -> (i32, i32, i32) {
    %c0_i32 = arith.constant 0 : i32
    %c0_i32_0 = arith.constant 0 : i32
    %c0_i32_1 = arith.constant 0 : i32
    return %arg0, %c0_i32, %c0_i32_0 : i32, i32, i32
  }
  func.func @transform_5(%arg0: i32, %arg1: i32) -> (i32, i32, i32) {
    %c0_i32 = arith.constant 0 : i32
    %c0_i32_0 = arith.constant 0 : i32
    %c0_i32_1 = arith.constant 0 : i32
    return %arg0, %c0_i32, %c0_i32_0 : i32, i32, i32
  }
  func.func @transform_6(%arg0: i32, %arg1: i32) -> (i32, i32, i32) {
    %c0_i32 = arith.constant 0 : i32
    %c0_i32_0 = arith.constant 0 : i32
    %c0_i32_1 = arith.constant 0 : i32
    return %arg0, %c0_i32, %c0_i32_0 : i32, i32, i32
  }
  func.func @transform_7(%arg0: i32, %arg1: i32) -> (i32, i32, i32) {
    %c0_i32 = arith.constant 0 : i32
    %c0_i32_0 = arith.constant 0 : i32
    %c0_i32_1 = arith.constant 0 : i32
    return %arg0, %c0_i32, %c0_i32_0 : i32, i32, i32
  }
  func.func @transform_8(%arg0: i32, %arg1: i32) -> (i32, i32, i32) {
    %c0_i32 = arith.constant 0 : i32
    %c0_i32_0 = arith.constant 0 : i32
    %c0_i32_1 = arith.constant 0 : i32
    return %arg0, %c0_i32, %c0_i32_0 : i32, i32, i32
  }
  func.func @transform_9(%arg0: i32, %arg1: i32) -> (i32, i32, i32) {
    %c0_i32 = arith.constant 0 : i32
    %c0_i32_0 = arith.constant 0 : i32
    %c0_i32_1 = arith.constant 0 : i32
    return %arg0, %c0_i32, %c0_i32_0 : i32, i32, i32
  }
  func.func @transform_10(%arg0: i32, %arg1: i32) -> (i32, i32, i32) {
    %c0_i32 = arith.constant 0 : i32
    %c0_i32_0 = arith.constant 0 : i32
    return %arg0, %c0_i32, %arg1 : i32, i32, i32
  }
  func.func @transform_11(%arg0: i32, %arg1: i32) -> (i32, i32, i32) {
    %c0_i32 = arith.constant 0 : i32
    %c0_i32_0 = arith.constant 0 : i32
    return %arg0, %c0_i32, %arg1 : i32, i32, i32
  }
  func.func @transform_12(%arg0: i32, %arg1: i32) -> (i32, i32, i32) {
    %c0_i32 = arith.constant 0 : i32
    %c0_i32_0 = arith.constant 0 : i32
    return %arg0, %arg1, %c0_i32 : i32, i32, i32
  }
  func.func @transform_13(%arg0: i32, %arg1: i32) -> (i32, i32, i32) {
    %c0_i32 = arith.constant 0 : i32
    %c0_i32_0 = arith.constant 0 : i32
    %c0_i32_1 = arith.constant 0 : i32
    return %arg0, %c0_i32, %c0_i32_0 : i32, i32, i32
  }
  func.func @transform_14(%arg0: i32, %arg1: i32) -> (i32, i32) {
    %c0_i32 = arith.constant 0 : i32
    %c0_i32_0 = arith.constant 0 : i32
    %c0_i32_1 = arith.constant 0 : i32
    return %c0_i32, %c0_i32_0 : i32, i32
  }
  func.func @transform_15(%arg0: i32, %arg1: i32) -> (i32, i32) {
    %c0_i32 = arith.constant 0 : i32
    %c0_i32_0 = arith.constant 0 : i32
    %c0_i32_1 = arith.constant 0 : i32
    return %c0_i32, %c0_i32_0 : i32, i32
  }
  func.func @transform_16(%arg0: i32, %arg1: i32) -> (i32, i32) {
    %c0_i32 = arith.constant 0 : i32
    %c0_i32_0 = arith.constant 0 : i32
    %c0_i32_1 = arith.constant 0 : i32
    return %c0_i32, %c0_i32_0 : i32, i32
  }
}

</mosaic_0001>

<bundles_post_ra>
// kernel: sdxl_text_encoder_2.1
= control target key start
LH: loop header
LB: loop body
LE: loop exit
PB: predicated region body
PF: predicated region fallthrough
CT: control target
= control target key end

     0   :  { %s3623_s0 = inlined_call_operand.vmem [shape: f32[16,128], index: 0, kind: input, shape index: {}]   ;;  %s3624_s1 = inlined_call_operand.vmem [shape: f32[8,8], index: 1, kind: input, shape index: {}]   ;;  %s3625_s2 = inlined_call_operand.vmem [shape: f32[2,1,128], index: 2, kind: input, shape index: {}]   ;;  %s3626_s3 = inlined_call_operand.vmem [shape: f32[2,1,128], index: 3, kind: input, shape index: {}]   ;;  %s3627_s4 = inlined_call_operand.hbm [shape: bf16[2,128,384], index: 4, kind: input, shape index: {}]   ;;  %s3628_s5 = inlined_call_operand.vmem [shape: f32[2,1,384], index: 5, kind: input, shape index: {}]   ;;  %s3629_s6 = inlined_call_operand.vmem [shape: bf16[2,128,128], index: 6, kind: input, shape index: {}]   ;;  %s3630_s7 = inlined_call_operand.vmem [shape: f32[2,1,128], index: 7, kind: input, shape index: {}]   ;;  %s3631_s8 = inlined_call_operand.vmem [shape: f32[2,1,128], index: 8, kind: input, shape index: {}]   ;;  %s3632_s9 = inlined_call_operand.vmem [shape: f32[2,1,128], index: 9, kind: input, shape index: {}]   ;;  %s3633_s10 = inlined_call_operand.hbm [shape: bf16[2,128,256], index: 10, kind: input, shape index: {}]   ;;  %s3634_s11 = inlined_call_operand.vmem [shape: f32[2,1,256], index: 11, kind: input, shape index: {}]   ;;  %s3635_s12 = inlined_call_operand.hbm [shape: bf16[2,256,128], index: 12, kind: input, shape index: {}]   ;;  %s3636_s13 = inlined_call_operand.vmem [shape: f32[2,1,128], index: 13, kind: input, shape index: {}]   ;;  %s3637_s14 = inlined_call_operand.vmem [shape: f32[1,128], index: 14, kind: input, shape index: {}]   ;;  %s3638_s15 = inlined_call_operand.vmem [shape: f32[1,128], index: 15, kind: input, shape index: {}]   ;;  %s3639_s16 = inlined_call_operand.vmem [shape: f32[16,128], index: 16, kind: output, shape index: {}]  }
   0x1   :  { %3659 = sst [smem:[#allocation26_spill]] %s3623_s0 }
   0x2   :  { %3660 = sst [smem:[#allocation27_spill]] %s3624_s1 }
   0x3   :  { %3661 = sst [smem:[#allocation28_spill]] %s3626_s3 }
   0x4   :  { %3662 = sst [smem:[#allocation29_spill]] %s3627_s4 }
   0x5   :  { %3663 = sst [smem:[#allocation30_spill]] %s3628_s5 }
   0x6   :  { %3664 = sst [smem:[#allocation31_spill]] %s3629_s6 }
   0x7   :  { %3665 = sst [smem:[#allocation32_spill]] %s3630_s7 }
   0x8   :  { %3666 = sst [smem:[#allocation33_spill]] %s3631_s8 }
   0x9   :  { %3667 = sst [smem:[#allocation34_spill]] %s3632_s9 }
   0xa   :  { %3668 = sst [smem:[#allocation35_spill]] %s3633_s10 }
   0xb   :  { %3669 = sst [smem:[#allocation36_spill]] %s3634_s11 }
   0xc   :  { %3670 = sst [smem:[#allocation37_spill]] %s3635_s12 }
   0xd   :  { %3671 = sst [smem:[#allocation38_spill]] %s3636_s13 }
   0xe   :  { %3672 = sst [smem:[#allocation39_spill]] %s3637_s14 }
   0xf   :  { %3673 = sst [smem:[#allocation40_spill]] %s3638_s15 }
  0x10   :  { %3674 = sst [smem:[#allocation41_spill]] %s3639_s16 }
  0x11   :  { %21 = vsyncpa [#allocation10], 0 }
  0x12   :  { %23 = vsyncpa [#allocation10 + $0x1], 0 }
  0x13   :  { %24 = vsyncpa [#allocation12], 0 }
  0x14   :  { %26 = vsyncpa [#allocation12 + $0x1], 0  ;;  %s3040_s21 = smov 0   ;;  %s3042_s22 = smov 0  }
  0x15   :  { %s3044_s23 = smov 0   ;;  %s3046_s24 = smov 0  }
  0x16   :  { %s3048_s25 = smov 0   ;;  %s3050_s26 = smov 0  }
  0x17   :  { %s3052_s27 = smov 0   ;;  %s3054_s28 = smov 0  }
  0x18   :  { %s3056_s29 = smov 0   ;;  %s3058_s30 = smov 0  }
  0x19   :  { %s3060_s0 = smov 0  }
  0x1a LB: > { %3675 = sst [smem:[#allocation16_spill]] %s2903_s22  ;;  %s41_s17 = sadd.s32 1, %s2931_s29  ;;  %s2939_s0 = sphi %s3060_s0, %s32_s0   ;;  %s2935_s30 = sphi %s3058_s30, %s3736_s30   ;;  %s2931_s29 = sphi %s3056_s29, %s3735_s29   ;;  %s2927_s28 = sphi %s3054_s28, %s3734_s28   ;;  %s2923_s27 = sphi %s3052_s27, %s3733_s27   ;;  %s2919_s26 = sphi %s3050_s26, %s3732_s26   ;;  %s2915_s25 = sphi %s3048_s25, %s3731_s25   ;;  %s2911_s24 = sphi %s3046_s24, %s3730_s24   ;;  %s2907_s23 = sphi %s3044_s23, %s3729_s23   ;;  %s2903_s22 = sphi %s3042_s22, %s3728_s22   ;;  %s2899_s21 = sphi %s3040_s21, %s3727_s21  }
  0x1b   : > { %3676 = sst [smem:[#allocation17_spill]] %s2907_s23  ;;  %s44_s18 = sadd.s32 1, %s2935_s30 }
  0x1c   : > { %3677 = sst [smem:[#allocation18_spill]] %s2915_s25  ;;  %p42_p0 = scmp.ge.s32.totalorder %s41_s17, 2 }
  0x1d   : > { %3678 = sst [smem:[#allocation19_spill]] %s2919_s26  ;;  %p3645_p1 = scmp.eq.s32.totalorder %s2939_s0, 0 }
  0x1e   : > { %3679 = sst [smem:[#allocation20_spill]] %s2931_s29  ;;  %s303_s19 = sadd.s32 1, %s2907_s23 }
  0x1f   : > { %3680 = sst [smem:[#allocation21_spill]] %s2935_s30  ;;  %p310_p2 = scmp.ne.s32.totalorder %s2907_s23, %s2903_s22 }
  0x20   : > { %s3738_s17 = smov (%p42_p0, %s41_s17), 0  ;;  %s3740_s18 = smov (!%p42_p0, %s44_s18), %s2935_s30 }
  0x21   : > { %3681 = sst [smem:[#allocation22_spill]] %s3738_s17  ;;  %s299_s20 = ssub.s32 %s2931_s29, %s3738_s17 }
  0x22   : > { %p3108_p3 = por %p310_p2, %p3645_p1  ;;  %p46_p4 = scmp.ge.s32.totalorder %s3740_s18, 2 }
  0x23   : > { %p3644_p6 = scmp.lt.s32.totalorder %s2939_s0, 4  ;;  %s563_s15 = sand.u32 1, %s2939_s0  }
  0x24   : > { %s3742_s18 = smov (%p46_p4, %s3740_s18), 0  ;;  %s565_s14 = sand.u32 1, %s2907_s23  }
  0x25   : > { %3683 = sst [smem:[#allocation23_spill]] %s3742_s18  ;;  %s3121_s1 = ssub.s32 %s2935_s30, %s3742_s18 }
  0x26   : > { %s300_s17 = sor.u32 %s299_s20, %s3121_s1  ;;  %s3124_s11 = sshll.u32 %s565_s14, 6 }
  0x27   : > { %p301_p7 = scmp.eq.s32.totalorder %s300_s17, 0  ;;  %s3646_s13 = sshll.u32 %s2935_s30, 5 }
  0x28   : > { %s567_s9 = scalar_lea.vmem [#allocation11], %s3124_s11  ;;  %s572_s7 = sadd.s32 %s2931_s29, %s3646_s13 }
  0x29   : > { %s575_s8 = sshll.u32 %s567_s9, 4  ;;  %s2272_s6 = sshll.u32 %s572_s7, 6  ;;  %s3134_s8 = int_to_ptr.vmem [resolvable:$true] %s575_s8 }
  0x2a   : > { %s3129_s5 = scalar_select %p301_p7, %s2907_s23, %s303_s19  }
  0x2b   : > { %p3140_p8 = pnand %p3644_p6, %p3108_p3  ;;  %s3686_s10 = sld [smem:[#allocation35_spill]] }
  0x2c   : > { %3684 = sst [smem:[#allocation24_spill]] %s3129_s5  ;;  %p2277_p9 = scmp.ge.s32.totalorder %s2939_s0, 1 }
  0x2d   : > { %s3150_s9 = scalar_lea.sflag [#allocation12], %s563_s15  ;;  %p3650_p11 = pneg %p3140_p8 }
  0x31   : > { %s3147_s17 = scalar_lea.hbm %s3686_s10, %s2272_s6  ;;  %s2760_s6 = scalar_lea.hbm %s3686_s10, 4096 }
  0x32   : > { %s2755_s7 = scalar_lea.hbm %s3147_s17, 1024  ;;  %p2761_p0 = scmp.lt.u32.totalorder %s3147_s17, %s3686_s10 }
  0x33   : > { %p2756_p10 = scmp.ne.s32.totalorder %s3147_s17, %s2755_s7  ;;  %p2762_p2 = scmp.lt.u32.totalorder %s2760_s6, %s2755_s7 }
  0x34   : > { %p2764_p4 = scmp.lt.u32.totalorder %s2755_s7, %s3147_s17 }
  0x35   : > { %p2758_p12 = pnand %p3650_p11, %p2756_p10  ;;  %p2763_p3 = por %p2762_p2, %p2761_p0 }
  0x37   : > { %p2759_p13 = pneg %p2758_p12  ;;  %p2765_p7 = por %p2764_p4, %p2763_p3 }
  0x39   : > { %p2766_p6 = pnand %p2765_p7, %p2759_p13 }
  0x3b   : > { %2769 = shalt.err (!%p2766_p6)
}
  0x3c   : > { %s2770_s15 = scalar_lea.vmem %s3134_s8, 1024  ;;  %s2941_s16 = smov [#allocation11]  }
  0x3d   : > { %p2771_p10 = scmp.ne.s32.totalorder %s3134_s8, %s2770_s15  ;;  %s2775_s19 = sshll.u32 %s2941_s16, 4  ;;  %s2776_s19 = int_to_ptr.vmem [resolvable:$false] %s2775_s19 }
  0x3e   : > { %s2777_s14 = scalar_lea.vmem %s2776_s19, 2048  ;;  %p2778_p1 = scmp.lt.s32.totalorder %s3134_s8, %s2776_s19 }
  0x3f   : > { %p2773_p12 = pnand %p2771_p10, %p3650_p11  ;;  %p2779_p0 = scmp.lt.s32.totalorder %s2777_s14, %s2770_s15 }
  0x41   : > { %p2774_p5 = pneg %p2773_p12  ;;  %p2780_p2 = por %p2779_p0, %p2778_p1 }
  0x43   : > { %p2781_p3 = pnand %p2780_p2, %p2774_p5 }
  0x45   : > { %2784 = shalt.err (!%p2781_p3)
}
  0x46   : > { %s2942_s7 = smov 128   ;;  %s3647_s6 = smov 64  }
  0x47   : > { %s3648_s20 = smov 4   ;;  %p622_p1 = scmp.lt.s32.totalorder %s2939_s0, 5 }
  0x48   : > { %2563 = dma.hbm_to_vmem [thread:$0]  (!%p3140_p8), %s3147_s17, 1024, %s3134_s8, %s3150_s9, %s2942_s7, %s3647_s6, %s3648_s20  }
  0x49   : > { %p3183_p5 = pnand %p2277_p9, %p622_p1  ;;  %s3649_s16 = sadd.s32 4294967295, %s2939_s0  }
  0x4a   : > { %p143_p6 = scmp.eq.s32.totalorder %s3121_s1, 0  ;;  %s145_s19 = sadd.s32 1, %s2919_s26 }
  0x4b   : > { %s3687_s15 = scalar_select %p3183_p5, 1, 0 }
  0x4c   : > { %p152_p13 = scmp.ne.s32.totalorder %s2919_s26, %s2915_s25  ;;  %p3689_p4 = scmp.eq.s32.totalorder %s2939_s0, 0 }
  0x4d   : > { %s3193_s14 = scalar_select %p143_p6, %s2919_s26, %s145_s19  }
  0x4e   : > { %p154_p7 = por %p3689_p4, %p152_p13  ;;  %p158_p10 = scmp.ne.s32.totalorder %s2915_s25, %s2911_s24 }
  0x4f   : > { %3688 = sst [smem:[#allocation25_spill]] %s3193_s14  ;;  %p159_p12 = scmp.eq.s32.totalorder %s3649_s16, 0 }
  0x50   : > { %s509_s13 = sand.u32 1, %s2919_s26   ;;  %p3691_p9 = scmp.ne.s32.totalorder %s2903_s22, %s2899_s21 }
  0x51   : > { %s2547_s8 = smul.u32 192, %s509_s13  ;;  %p3202_p0 = por %p159_p12, %p158_p10 }
  0x52   : > { %p3209_p2 = por %p3691_p9, %p159_p12  ;;  %s2548_s1 = smul.u32 3072, %s2935_s30 }
  0x53   : > { %s3690_s17 = scalar_select %p3202_p0, 1, 0 }
  0x54   : > { %s3692_s7 = scalar_select %p3209_p2, 1, 0 }
  0x55   : > { %s513_s6 = scalar_lea.vmem [#allocation9], %s2547_s8  ;;  %p3693_p3 = scmp.lt.s32.totalorder %s2939_s0, 4 }
  0x56   : > { %s520_s19 = sshll.u32 %s513_s6, 4  ;;  %s3695_s4 = sld [smem:[#allocation29_spill]]  ;;  %s3225_s19 = int_to_ptr.vmem [resolvable:$true] %s520_s19 }
  0x57   : > { %p3216_p1 = pnand %p3693_p3, %p154_p7  ;;  %s3227_s21 = scalar_lea.sflag [#allocation10], %s509_s13 }
  0x59   : > { %p2787_p13 = pneg %p3216_p1 }
  0x5c   : > { %s3223_s10 = scalar_lea.hbm %s3695_s4, %s2548_s1  ;;  %s2790_s1 = scalar_lea.hbm %s3695_s4, 6144 }
  0x5d   : > { %s2785_s6 = scalar_lea.hbm %s3223_s10, 3072  ;;  %p2791_p10 = scmp.lt.u32.totalorder %s3223_s10, %s3695_s4 }
  0x5e   : > { %p2786_p6 = scmp.ne.s32.totalorder %s3223_s10, %s2785_s6  ;;  %p2792_p12 = scmp.lt.u32.totalorder %s2790_s1, %s2785_s6 }
  0x5f   : > { %p2794_p3 = scmp.lt.u32.totalorder %s2785_s6, %s3223_s10 }
  0x60   : > { %p2788_p4 = pnand %p2787_p13, %p2786_p6  ;;  %p2793_p9 = por %p2792_p12, %p2791_p10 }
  0x62   : > { %p2789_p7 = pneg %p2788_p4  ;;  %p2795_p11 = por %p2794_p3, %p2793_p9 }
  0x64   : > { %p2796_p2 = pnand %p2795_p11, %p2789_p7 }
  0x66   : > { %2799 = shalt.err (!%p2796_p2)
}
  0x67   : > { %s2800_s13 = scalar_lea.vmem %s3225_s19, 3072  ;;  %s2945_s16 = smov [#allocation9]  }
  0x68   : > { %p2801_p6 = scmp.ne.s32.totalorder %s3225_s19, %s2800_s13  ;;  %s2805_s8 = sshll.u32 %s2945_s16, 4  ;;  %s2806_s8 = int_to_ptr.vmem [resolvable:$false] %s2805_s8 }
  0x69   : > { %s2807_s14 = scalar_lea.vmem %s2806_s8, 6144  ;;  %p2808_p5 = scmp.lt.s32.totalorder %s3225_s19, %s2806_s8 }
  0x6a   : > { %p2803_p4 = pnand %p2801_p6, %p2787_p13  ;;  %p2809_p10 = scmp.lt.s32.totalorder %s2807_s14, %s2800_s13 }
  0x6c   : > { %p2804_p0 = pneg %p2803_p4  ;;  %p2810_p12 = por %p2809_p10, %p2808_p5 }
  0x6e   : > { %p2811_p9 = pnand %p2810_p12, %p2804_p0 }
  0x70   : > { %2814 = shalt.err (!%p2811_p9)
}
  0x71   : > { %s2946_s6 = smov 192   ;;  %s2947_s1 = smov 12  }
  0x72   : > { %2560 = dma.hbm_to_vmem [thread:$0]  (!%p3216_p1), %s3223_s10, 3072, %s3225_s19, %s3227_s21, %s2946_s6, %s2946_s6, %s2947_s1  }
  0x73   : > { %s2274_s24 = sshll.u32 %s2931_s29, 4  ;;  %s599_s16 = scalar_lea.vmem [#allocation13], %s3124_s11 }
  0x74   : > { %s608_s4 = sshll.u32 %s599_s16, 4  ;;  %s3696_s8 = sshll.u32 %s2935_s30, 5  ;;  %s3259_s4 = int_to_ptr.vmem [resolvable:$true] %s608_s4 }
  0x75   : > { %s605_s13 = sadd.s32 %s2274_s24, %s3696_s8  ;;  %s3697_s12 = sld [smem:[#allocation37_spill]] }
  0x76   : > { %s2276_s14 = sshll.u32 %s605_s13, 6  ;;  %p3698_p5 = pneg %p3140_p8 }
  0x7b   : > { %s3264_s23 = scalar_lea.hbm %s3697_s12, %s2276_s14  ;;  %s2820_s20 = scalar_lea.hbm %s3697_s12, 4096 }
  0x7c   : > { %s2815_s3 = scalar_lea.hbm %s3264_s23, 1024  ;;  %p2821_p1 = scmp.lt.u32.totalorder %s3264_s23, %s3697_s12 }
  0x7d   : > { %p2816_p11 = scmp.ne.s32.totalorder %s3264_s23, %s2815_s3  ;;  %p2822_p13 = scmp.lt.u32.totalorder %s2820_s20, %s2815_s3 }
  0x7e   : > { %p2824_p3 = scmp.lt.u32.totalorder %s2815_s3, %s3264_s23 }
  0x7f   : > { %p2818_p0 = pnand %p2816_p11, %p3698_p5  ;;  %p2823_p7 = por %p2822_p13, %p2821_p1 }
  0x81   : > { %p2819_p2 = pneg %p2818_p0  ;;  %p2825_p6 = por %p2824_p3, %p2823_p7 }
  0x83   : > { %p2826_p4 = pnand %p2825_p6, %p2819_p2 }
  0x85   : > { %2829 = shalt.err (!%p2826_p4)
}
  0x86   : > { %s2830_s5 = scalar_lea.vmem %s3259_s4, 1024  ;;  %p3699_p12 = pmov %p3698_p5 }
  0x87   : > { %p2831_p10 = scmp.ne.s32.totalorder %s3259_s4, %s2830_s5  ;;  %s2948_s26 = smov [#allocation13]  }
  0x88   : > { %s2835_s6 = sshll.u32 %s2948_s26, 4  ;;  %s2836_s6 = int_to_ptr.vmem [resolvable:$false] %s2835_s6 }
  0x89   : > { %p2833_p9 = pnand %p2831_p10, %p3699_p12  ;;  %s2837_s1 = scalar_lea.vmem %s2836_s6, 2048 }
  0x8a   : > { %p2838_p5 = scmp.lt.s32.totalorder %s3259_s4, %s2836_s6  ;;  %p2839_p0 = scmp.lt.s32.totalorder %s2837_s1, %s2830_s5 }
  0x8b   : > { %p2834_p11 = pneg %p2833_p9 }
  0x8c   : > { %p2840_p1 = por %p2839_p0, %p2838_p5 }
  0x8e   : > { %p2841_p13 = pnand %p2840_p1, %p2834_p11 }
  0x90   : > { %2844 = shalt.err (!%p2841_p13)
}
  0x91   : > { %s3700_s3 = smov 4   ;;  %s3701_s24 = smov 64  }
  0x92   : > { %2566 = dma.hbm_to_vmem [thread:$0]  (!%p3140_p8), %s3264_s23, 1024, %s3259_s4, %s3150_s9, %s3701_s24, %s3701_s24, %s3700_s3  }
  0x93   : > { %p3702_p2 = scmp.ne.s32.totalorder %s3687_s15, 0 }
  0x94   : > { %s628_s16 = sand.u32 (!%p3702_p2), 1, %s2915_s25   ;;  %p3703_p7 = scmp.ne.s32.totalorder (!%p3702_p2), %s3690_s17, 0 }
  0x95   : > { %626 = sbr.rel (%p3702_p2) target bundleno = 3091 (0xc13), region = 84  ;;  %s629_s13 = scalar_lea.sflag (!%p3702_p2), [#allocation10], %s628_s16 }
  0x96   : > { %s2549_s8 = smul.u32 (!%p3702_p2), 192, %s628_s16 }
  0x98   : > { %s3296_s14 = scalar_lea.vmem (!%p3702_p2), [#allocation9], %s2549_s8 }
  0x9c   : > { %2890 = dma.done.wait (%p3703_p7), %s629_s13, 3072  }
  0x9d   : > { %2892 = vsyncadd (%p3703_p7), %s629_s13, 4294964224  ;;  %s3704_s18 = sadd.s32 4294967295, %s2939_s0   ;;  %s639_s23 = sand.u32 1, %s2903_s22  }
  0x9e   : > { %s637_s4 = sand.u32 1, %s3704_s18   ;;  %s2278_s9 = sshll.u32 %s639_s23, 6 }
  0x9f   : > { %s638_s15 = scalar_lea.sflag [#allocation12], %s637_s4  ;;  %s3305_s10 = scalar_lea.vmem [#allocation11], %s2278_s9 }
  0xa0   : > { %p3705_p8 = scmp.ne.s32.totalorder %s3692_s7, 0 }
  0xa2   : > { %2894 = dma.done.wait (%p3705_p8), %s638_s15, 2048  }
  0xa3   : > { %2896 = vsyncadd (%p3705_p8), %s638_s15, 4294965248  ;;  %p738_p3 = scmp.lt.s32.totalorder %s2927_s28, 1  ;;  %p764_p6 = scmp.lt.s32.totalorder %s2923_s27, 1 }
  0xa4   : > { %s3707_s8 = sld [smem:[#allocation31_spill]]  ;;  %s3708_s23 = sld [smem:[#allocation32_spill]] }
  0xa5   : > { %s3314_s17 = scalar_select %p738_p3, %s2927_s28, 1 }
  0xa6   : > { %s765_s11 = scalar_select %p764_p6, %s2923_s27, 1 }
  0xa7   : > { %s2550_s1 = smul.u32 3, %s3314_s17  ;;  %s2360_s3 = sshll.u32 %s3314_s17, 6 }
  0xa8   : > { %s3709_s29 = sld [smem:[#allocation30_spill]]  ;;  %s3710_s21 = sld [smem:[#allocation33_spill]] }
  0xa9   : > { %s3711_s25 = sld [smem:[#allocation34_spill]]  ;;  %s2282_s24 = sshll.u32 %s3314_s17, 1 }
  0xaa   : > { %s3330_s13 = scalar_lea.vmem %s3707_s8, %s2360_s3  ;;  %s755_s15 = scalar_lea.vmem %s3708_s23, %s3314_s17 }
  0xab   : > { %s3350_s3 = sadd.s32 %s2282_s24, %s765_s11  ;;  %s3712_s18 = sld [smem:[#allocation38_spill]] }
  0xac   : > { %p2283_p4 = scmp.ne.s32.totalorder %s2923_s27, 0 }
  0xad   : > { %p2284_p10 = scmp.ne.s32.totalorder (!%p2283_p4), %s2927_s28, 0 }
  0xae   : > { %s3339_s7 = scalar_lea.vmem %s3709_s29, %s2550_s1  ;;  %s758_s5 = scalar_lea.vmem %s3710_s21, %s3314_s17 }
  0xaf   : > { %s761_s22 = scalar_lea.vmem %s3711_s25, %s3314_s17  ;;  %s3713_s29 = sld [smem:[#allocation36_spill]] }
  0xb0   : > { %s3360_s1 = scalar_lea.vmem [#allocation13], %s2278_s9  ;;  %777 = sbr.rel (%p2283_p4) target bundleno = 2281 (0x8e9), region = 100 }
  0xb1   : > { %s772_s4 = scalar_lea.vmem %s3712_s18, %s3314_s17 }
  0xb5   : > { %s768_s30 = scalar_lea.vmem %s3713_s29, %s3350_s3 }
  0xb7   : > { %781 = sbr.rel (%p2284_p10) target bundleno = 191 (0xbf), region = 104  ;;  %s3714_s19 = sld [smem:[#allocation26_spill]] (!%p2284_p10) }
  0xbd   : > { %v782_v0 = vld [vmem:[%s3714_s19] sm:$0xff] (!%p2284_p10)  ;;  %v783_v1 = vld [vmem:[%s3714_s19 + $0x8] sm:$0xff] (!%p2284_p10) }
  0xbe   : > { %784 = vst [vmem:[#allocation2] sm:$0xff] %v782_v0  ;;  %785 = vst [vmem:[#allocation2 + $0x8] sm:$0xff] %v783_v1 }
  0xbf PF: > { %v2667_v4 = vld [vmem:[%s3296_s14 + $0x4] ss:$12 sps:$4 sm:$0xff]   ;;  %v2669_v5 = vld [vmem:[%s3296_s14] ss:$12 sps:$4 sm:$0xff]   ;;  %v2949_v6 = vmov 0.0   ;;  %v2950_v32 = vmov 0   ;;  %s3715_s21 = scalar_lea.vmem %s3625_s2, %s3314_s17  ;;  %v864_v55 = vlaneseq }
  0xc0   : > { %2419 = vmatprep.subr.bf16.mxu1 %v2949_v6  ;;  %1769 = vst [vmem:[#allocation4] sm:$0xff] %v2949_v6  ;;  %1770 = vst [vmem:[#allocation4 + $0x8] sm:$0xff] %v2949_v6  ;;  %v2670_v7 = vld [vmem:[%s3296_s14 + $0x8] ss:$12 sps:$4 sm:$0xff]   ;;  %1007 = vmatprep.subr.bf16.mxu0 %v2667_v4  ;;  %v2673_v17 = vld [vmem:[%s3296_s14 + $0x18] ss:$12 sps:$4 sm:$0xff]  }
  0xc1   : > { %v2671_v8 = vld [vmem:[%s3296_s14 + $0x1c] ss:$12 sps:$4 sm:$0xff]   ;;  %1008 = vmatpush1.bf16.msra.mxu0 %v2669_v5  ;;  %2420 = vmatpush3.bf16.msra.mxu1 %v2670_v7  ;;  %v2674_v18 = vld [vmem:[%s3296_s14 + $0x20] ss:$12 sps:$4 sm:$0xff]   ;;  %v2678_v21 = vld [vmem:[%s3296_s14 + $0x38] ss:$12 sps:$4 sm:$0xff]  }
  0xc2   : > { %1009 = vmatprep.subr.bf16.mxu0 %v2671_v8  ;;  %2421 = vmatprep.subr.bf16.mxu1 %v2949_v6  ;;  %v2675_v19 = vld [vmem:[%s3296_s14 + $0x34] ss:$12 sps:$4 sm:$0xff]   ;;  %v2677_v20 = vld [vmem:[%s3296_s14 + $0x30] ss:$12 sps:$4 sm:$0xff]   ;;  %v2679_v22 = vld [vmem:[%s3296_s14 + $0x4c] ss:$12 sps:$4 sm:$0xff]  }
  0xc3   : > { %v2681_v23 = vld [vmem:[%s3296_s14 + $0x48] ss:$12 sps:$4 sm:$0xff]   ;;  %v2682_v24 = vld [vmem:[%s3296_s14 + $0x50] ss:$12 sps:$4 sm:$0xff]   ;;  %v2685_v26 = vld [vmem:[%s3296_s14 + $0x60] ss:$12 sps:$4 sm:$0xff]   ;;  %1039 = vmatprep.mubr.bf16.mxu0 %v2950_v32 }
  0xc4   : > { %v2683_v25 = vld [vmem:[%s3296_s14 + $0x64] ss:$12 sps:$4 sm:$0xff]   ;;  %v2686_v27 = vld [vmem:[%s3296_s14 + $0x68] ss:$12 sps:$4 sm:$0xff]   ;;  %v2690_v30 = vld [vmem:[%s3296_s14 + $0x80] ss:$12 sps:$4 sm:$0xff]  }
  0xc5   : > { %v3370_v2 = vld [vmem:[#allocation2] sm:$0xff]  ;;  %v3372_v3 = vld [vmem:[#allocation2 + $0x8] sm:$0xff]  ;;  %1010 = vmatpush1.bf16.msra.mxu0 %v2673_v17  ;;  %2422 = vmatpush3.bf16.msra.mxu1 %v2674_v18  ;;  %vm2951_vm0 = vmmov 0   ;;  %v2693_v33 = vld [vmem:[%s3296_s14 + $0x90] ss:$12 sps:$4 sm:$0xff]   ;;  %s3716_s16 = sld [smem:[#allocation28_spill]] }
  0xc6   : > { %790 = vadd.xlane.f32.xlu0 %v3370_v2  ;;  %2423 = vmatprep.subr.bf16.mxu1 %v2949_v6  ;;  %v2687_v28 = vld [vmem:[%s3296_s14 + $0x7c] ss:$12 sps:$4 sm:$0xff]   ;;  %v2689_v29 = vld [vmem:[%s3296_s14 + $0x78] ss:$12 sps:$4 sm:$0xff]   ;;  %v2691_v31 = vld [vmem:[%s3296_s14 + $0x94] ss:$12 sps:$4 sm:$0xff]  }
  0xc7   : > { %1011 = vmatprep.subr.bf16.mxu0 %v2675_v19  ;;  %2435 = vmatprep.mubr.msk.bf16.mxu1 %vm2951_vm0, %v2949_v6  ;;  %v2694_v34 = vld [vmem:[%s3296_s14 + $0x98] ss:$12 sps:$4 sm:$0xff]   ;;  %v2697_v36 = vld [vmem:[%s3296_s14 + $0xa8] ss:$12 sps:$4 sm:$0xff]   ;;  %v2698_v37 = vld [vmem:[%s3296_s14 + $0xb0] ss:$12 sps:$4 sm:$0xff]  }
  0xc8   : > { %v2695_v35 = vld [vmem:[%s3296_s14 + $0xac] ss:$12 sps:$4 sm:$0xff]   ;;  %v2285_v46 = vld [vmem:[%s3715_s21] ss:$0 sm:$0xff]  ;;  %v865_v56 = vshrl.u32 %v864_v55, 7  ;;  %vm1092_vm1 = vcmask 519168  }
  0xc9   : > { %1012 = vmatpush1.bf16.msra.mxu0 %v2677_v20  ;;  %2424 = vmatpush3.bf16.msra.mxu1 %v2678_v21  ;;  %v862_v59 = vld [vmem:[%s3339_s7] sm:$0x7]  ;;  %s2952_s7 = smov 64   ;;  %vm1405_vm2 = vcmask 1043456   ;;  %vm1164_vm3 = vcmask 523264   ;;  %s3718_s12 = sld [smem:[#allocation27_spill]] }
  0xca   : > { %792 = vadd.xlane.f32.xlu0 %v3372_v3  ;;  %2425 = vmatprep.subr.bf16.mxu1 %v2949_v6  ;;  %v866_v57 = vsub.s32 0, %v865_v56  ;;  %v874_v58 = vsub.s32 2, %v865_v56  ;;  %v870_v60 = vsub.s32 1, %v865_v56  ;;  %vm1349_vm4 = vcmask 64512  }
  0xcb   : > { %1013 = vmatprep.subr.bf16.mxu0 %v2679_v22  ;;  %s3717_s8 = scalar_lea.vmem %s3716_s16, %s3314_s17  ;;  %vm1600_vm5 = vcmask 523268   ;;  %vm1594_vm6 = vcmask 1043968   ;;  %vm1608_vm7 = vcmask 1048068  }
  0xcc   : > { %v2286_v50 = vld [vmem:[%s3717_s8] ss:$0 sm:$0xff]  ;;  %v867_v61 = vrot.slane %v862_v59, %v866_v57  ;;  %v875_v62 = vrot.slane %v862_v59, %v874_v58  ;;  %v871_v63 = vrot.slane %v862_v59, %v870_v60 }
  0xcd   : > { %1014 = vmatpush1.bf16.msra.mxu0 %v2681_v23  ;;  %2426 = vmatpush3.bf16.msra.mxu1 %v2682_v24 }
  0xce   : > { %2427 = vmatprep.subr.bf16.mxu1 %v2949_v6  ;;  %1015 = vmatprep.subr.bf16.mxu0 %v2683_v25 }
  0xd1   : > { %1016 = vmatpush1.bf16.msra.mxu0 %v2685_v26  ;;  %2428 = vmatpush3.bf16.msra.mxu1 %v2686_v27 }
  0xd2   : > { %1017 = vmatprep.subr.bf16.mxu0 %v2687_v28  ;;  %2429 = vmatprep.subr.bf16.mxu1 %v2949_v6 }
  0xd5   : > { %1018 = vmatpush1.bf16.msra.mxu0 %v2689_v29  ;;  %2430 = vmatpush3.bf16.msra.mxu1 %v2690_v30 }
  0xd6   : > { %1019 = vmatprep.subr.bf16.mxu0 %v2691_v31  ;;  %2431 = vmatprep.subr.bf16.mxu1 %v2949_v6 }
  0xd9   : > { %1020 = vmatpush1.bf16.msra.mxu0 %v2693_v33  ;;  %2432 = vmatpush3.bf16.msra.mxu1 %v2694_v34 }
  0xda   : > { %1021 = vmatprep.subr.bf16.mxu0 %v2695_v35  ;;  %2433 = vmatprep.subr.bf16.mxu1 %v2949_v6 }
  0xdd   : > { %1022 = vmatpush1.bf16.msra.mxu0 %v2697_v36  ;;  %2434 = vmatpush3.bf16.msra.mxu1 %v2698_v37 }
  0xde   : > { %2463 = vmatprep.subr.bf16.mxu0 %v2949_v6  ;;  %2439 = vmatprep.subr.bf16.mxu1 %v2949_v6 }
 0x153   : > { %v791_v9 = vpop.xlane.xlu0 %790 }
 0x154   : > { %v795_v10 = vmul.f32 0.0078125, %v791_v9 }
 0x156   : > { %v3385_v11 = vsub.f32 %v3370_v2, %v795_v10 }
 0x157   : > { %v793_v12 = vpop.xlane.xlu0 %792 }
 0x158   : > { %v796_v13 = vmul.f32 0.0078125, %v793_v12  ;;  %v799_v14 = vmul.f32 %v3385_v11, %v3385_v11 }
 0x15a   : > { %v3390_v15 = vsub.f32 %v3372_v3, %v796_v13  ;;  %801 = vadd.xlane.f32.xlu1 %v799_v14 }
 0x15c   : > { %v800_v16 = vmul.f32 %v3390_v15, %v3390_v15 }
 0x15e   : > { %803 = vadd.xlane.f32.xlu1 %v800_v16 }
 0x1e7   : > { %v802_v38 = vpop.xlane.xlu1 %801 }
 0x1e8   : > { %v805_v39 = vmul.f32 0.0078125, %v802_v38 }
 0x1ea   : > { %v807_v40 = vadd.f32 1e-05, %v805_v39 }
 0x1eb   : > { %v804_v41 = vpop.xlane.xlu1 %803 }
 0x1ec   : > { %2707 = vrsqrt.f32 %v807_v40  ;;  %v806_v42 = vmul.f32 0.0078125, %v804_v41 }
 0x1ee   : > { %v808_v43 = vadd.f32 1e-05, %v806_v42 }
 0x1f0   : > { %2709 = vrsqrt.f32 %v808_v43 }
 0x1f6   : > { %v2708_v44 = vpop.eup %2707 }
 0x1f7   : > { %v811_v45 = vmul.f32 %v2708_v44, %v3385_v11 }
 0x1f9   : > { %v819_v49 = vmul.f32 %v2285_v46, %v811_v45  ;;  %v1163_v45 = vld [vmem:[%s3718_s12] sm:$0xff] }
 0x1fa   : > { %v2710_v47 = vpop.eup %2709 }
 0x1fb   : > { %v812_v48 = vmul.f32 %v2710_v47, %v3390_v15  ;;  %v827_v52 = vadd.f32 %v2286_v50, %v819_v49 }
 0x1fd   : > { %v820_v51 = vmul.f32 %v2285_v46, %v812_v48 }
 0x1ff   : > { %v828_v53 = vadd.f32 %v2286_v50, %v820_v51 }
 0x201   : > { %v829_v54 = vpack.c.bf16 %v828_v53, %v827_v52 }
 0x203   : > { %1040 = vmatmul.mubr.bf16.vlgmr.msra.gmra.mrb[0].mxu0 %v829_v54  ;;  %2436 = vmatmul.mubr.bf16.vlgmr.msra.gmra.mrb[0].mxu1 %v829_v54 }
 0x204   : > { %2441 = vmatprep.mubr.msk.bf16.mxu1 %vm2951_vm0, %v2949_v6  ;;  %2465 = vmatprep.mubr.msk.bf16.mxu0 %vm2951_vm0, %v2949_v6 }
 0x2d6   : > { %v1041_v0 = vpop.f32.mrb[0].mxu0  ;;  %v1084_v1 = vpop.f32.mrb[0].mxu1 }
 0x2d7   : > { %v1042_v4 = vadd.f32 %v1041_v0, %v867_v61  ;;  %v1085_v5 = vadd.f32 %v1084_v1, %v875_v62  ;;  %v1043_v7 = vpop.f32.mrb[1].mxu0  ;;  %v2437_v8 = vpop.f32.mrb[1].mxu1 }
 0x2d8   : > { %v1044_v9 = vadd.f32 %v1043_v7, %v871_v63  ;;  %v1045_v10 = vpop.f32.mrb[2].mxu0  ;;  %v1087_v11 = vpop.f32.mrb[2].mxu1 }
 0x2d9   : > { %v1091_v12 = vpack.c.bf16 %v1042_v4, %v1042_v4  ;;  %v3441_v13 = vpack.c.bf16 %v1085_v5, %v1085_v5  ;;  %v1046_v14 = vadd.f32 %v1045_v10, %v867_v61  ;;  %v1088_v15 = vadd.f32 %v1087_v11, %v875_v62  ;;  %v1047_v16 = vpop.f32.mrb[3].mxu0  ;;  %v2438_v17 = vpop.f32.mrb[3].mxu1 }
 0x2da   : > { %v1094_v18 = vpack.c.bf16 %v1044_v9, %v1044_v9  ;;  %v1048_v19 = vadd.f32 %v1047_v16, %v871_v63 }
 0x2db   : > { %1093 = vst.msk [vmem:[#allocation5] sm:$0xf] %vm1092_vm1, %v1091_v12  ;;  %1097 = vst.msk [vmem:[#allocation7] sm:$0xf] %vm1092_vm1, %v3441_v13  ;;  %v1122_v20 = vpack.c.bf16 %v1046_v14, %v1046_v14  ;;  %v3446_v21 = vpack.c.bf16 %v1088_v15, %v1088_v15  ;;  %1101 = vrot.lane.b32.xlu1 %v1091_v12, %s2952_s7 }
 0x2dc   : > { %1095 = vst.msk [vmem:[#allocation6] sm:$0xf] %vm1092_vm1, %v1094_v18  ;;  %v1125_v22 = vpack.c.bf16 %v1048_v19, %v1048_v19  ;;  %1109 = vrot.lane.b32.xlu0 %v1094_v18, %s2952_s7 }
 0x2dd   : > { %1124 = vst.msk [vmem:[#allocation5 + $0x8] sm:$0xf] %vm1092_vm1, %v1122_v20  ;;  %1130 = vst.msk [vmem:[#allocation7 + $0x8] sm:$0xf] %vm1092_vm1, %v3446_v21 }
 0x2de   : > { %1127 = vst.msk [vmem:[#allocation6 + $0x8] sm:$0xf] %vm1092_vm1, %v1125_v22 }
 0x2df   : > { %1142 = vrot.lane.b32.xlu1 %v1125_v22, %s2952_s7 }
 0x2e2   : > { %v1398_v23 = vld [vmem:[#allocation7] sm:$0xf] }
 0x2e3   : > { %1134 = vrot.lane.b32.xlu1 %v1122_v20, %s2952_s7  ;;  %v1407_v24 = vsel %vm1405_vm2, %v1398_v23, 0  ;;  %v1159_v25 = vld [vmem:[#allocation6] sm:$0xf]  ;;  %v1155_v27 = vld [vmem:[#allocation5] sm:$0xf] }
 0x2e4   : > { %2464 = vmatpush3.bf16.msra.mxu0 %v1407_v24  ;;  %v1169_v26 = vsel %vm1164_vm3, %v1159_v25, 0  ;;  %v1157_v38 = vld [vmem:[#allocation5 + $0x8] sm:$0xf] }
 0x2e5   : > { %2440 = vmatpush3.bf16.xpose.msra.mxu1 %v1169_v26  ;;  %2475 = vmatprep.subr.bf16.mxu0 %v2949_v6  ;;  %v1161_v34 = vld [vmem:[#allocation6 + $0x8] sm:$0xf] }
 0x2e6   : > { %2445 = vmatprep.subr.bf16.mxu1 %v2949_v6  ;;  %v1261_v36 = vsel %vm1164_vm3, %v1161_v34, 0 }
 0x2ec   : > { %2442 = vmatmul.mubr.msk.bf16.vlgmr.msra.gmra.mrb[4].mxu1 %vm1164_vm3, %v1155_v27 }
 0x2ed   : > { %2447 = vmatprep.mubr.msk.bf16.mxu1 %vm2951_vm0, %v2949_v6 }
 0x34d   : > { %v1102_v28 = vpop.permute.xlu1 %1101 }
 0x34e   : > { %1105 = vst.msk [vmem:[#allocation5 + $0x4] sm:$0xf] %vm1092_vm1, %v1102_v28  ;;  %v1110_v29 = vpop.permute.xlu0 %1109 }
 0x34f   : > { %1113 = vst.msk [vmem:[#allocation6 + $0x4] sm:$0xf] %vm1092_vm1, %v1110_v29 }
 0x351   : > { %v1143_v30 = vpop.permute.xlu1 %1142 }
 0x352   : > { %1146 = vst.msk [vmem:[#allocation6 + $0xc] sm:$0xf] %vm1092_vm1, %v1143_v30 }
 0x355   : > { %v1135_v31 = vpop.permute.xlu1 %1134  ;;  %v1156_v35 = vld [vmem:[#allocation5 + $0x4] sm:$0xf] }
 0x356   : > { %1138 = vst.msk [vmem:[#allocation5 + $0xc] sm:$0xf] %vm1092_vm1, %v1135_v31  ;;  %v1160_v32 = vld [vmem:[#allocation6 + $0x4] sm:$0xf] }
 0x357   : > { %v1215_v33 = vsel %vm1164_vm3, %v1160_v32, 0 }
 0x358   : > { %2446 = vmatpush3.bf16.xpose.msra.mxu1 %v1215_v33 }
 0x359   : > { %2451 = vmatprep.subr.bf16.mxu1 %v2949_v6  ;;  %v1162_v37 = vld [vmem:[#allocation6 + $0xc] sm:$0xf] }
 0x35a   : > { %v1307_v39 = vsel %vm1164_vm3, %v1162_v37, 0 }
 0x35d   : > { %v1158_v40 = vld [vmem:[#allocation5 + $0xc] sm:$0xf] }
 0x35f   : > { %2448 = vmatmul.mubr.msk.bf16.vlgmr.msra.gmra.mrb[8].mxu1 %vm1164_vm3, %v1156_v35 }
 0x360   : > { %2452 = vmatpush3.bf16.xpose.msra.mxu1 %v1261_v36  ;;  %2453 = vmatprep.mubr.msk.bf16.mxu1 %vm2951_vm0, %v2949_v6 }
 0x361   : > { %2457 = vmatprep.subr.bf16.mxu1 %v2949_v6 }
 0x367   : > { %2454 = vmatmul.mubr.msk.bf16.vlgmr.msra.gmra.mrb[12].mxu1 %vm1164_vm3, %v1157_v38 }
 0x368   : > { %2458 = vmatpush3.bf16.xpose.msra.mxu1 %v1307_v39  ;;  %2459 = vmatprep.mubr.msk.bf16.mxu1 %vm2951_vm0, %v2949_v6 }
 0x369   : > { %2469 = vmatprep.subr.bf16.mxu1 %v2949_v6 }
 0x36f   : > { %2460 = vmatmul.mubr.msk.bf16.vlgmr.msra.gmra.mrb[16].mxu1 %vm1164_vm3, %v1158_v40 }
 0x370   : > { %2471 = vmatprep.mubr.msk.bf16.mxu1 %vm2951_vm0, %v2949_v6 }
 0x3bf   : > { %v1205_v41 = vpop.f32.mrb[4].mxu1 }
 0x3c0   : > { %v2443_v42 = vpop.f32.mrb[5].mxu1  ;;  %v1206_v50 = vadd.f32 %v1205_v41, %v1163_v45 }
 0x3c1   : > { %v1208_v43 = vpop.f32.mrb[6].mxu1 }
 0x3c2   : > { %v2444_v44 = vpop.f32.mrb[7].mxu1  ;;  %v1350_v53 = vsel %vm1349_vm4, %v1206_v50, -inf  ;;  %v1400_v43 = vld [vmem:[#allocation7 + $0x8] sm:$0xf] }
 0x432   : > { %v1251_v46 = vpop.f32.mrb[8].mxu1 }
 0x433   : > { %v1252_v47 = vadd.f32 %v1251_v46, %v1163_v45  ;;  %v2449_v48 = vpop.f32.mrb[9].mxu1  ;;  %v1499_v46 = vsel %vm1405_vm2, %v1400_v43, 0 }
 0x434   : > { %v1254_v49 = vpop.f32.mrb[10].mxu1 }
 0x435   : > { %v2450_v51 = vpop.f32.mrb[11].mxu1  ;;  %v1353_v52 = vsel %vm1349_vm4, %v1252_v47, -inf  ;;  %v2699_v49 = vld [vmem:[%s3330_s13] sm:$0xff]  }
 0x436   : > { %1354 = vmax.xlane.f32.xlu0 %v1353_v52  ;;  %v2701_v51 = vld [vmem:[%s3330_s13 + $0x10] sm:$0xff]   ;;  %v2702_v52 = vld [vmem:[%s3330_s13 + $0x18] sm:$0xff]  }
 0x43a   : > { %1351 = vmax.xlane.f32.xlu0 %v1350_v53  ;;  %v1297_v54 = vpop.f32.mrb[12].mxu1  ;;  %v2703_v53 = vld [vmem:[%s3330_s13 + $0x20] sm:$0xff]  }
 0x43b   : > { %v1298_v55 = vadd.f32 %v1297_v54, %v1163_v45  ;;  %v2455_v56 = vpop.f32.mrb[13].mxu1 }
 0x43c   : > { %v1300_v57 = vpop.f32.mrb[14].mxu1 }
 0x43d   : > { %v2456_v58 = vpop.f32.mrb[15].mxu1  ;;  %v1356_v59 = vsel %vm1349_vm4, %v1298_v55, -inf }
 0x43e   : > { %1357 = vmax.xlane.f32.xlu0 %v1356_v59 }
 0x442   : > { %v1343_v60 = vpop.f32.mrb[16].mxu1 }
 0x443   : > { %v1344_v61 = vadd.f32 %v1343_v60, %v1163_v45  ;;  %v2461_v62 = vpop.f32.mrb[17].mxu1  ;;  %v2705_v60 = vld [vmem:[%s3330_s13 + $0x30] sm:$0xff]  }
 0x444   : > { %v1346_v63 = vpop.f32.mrb[18].mxu1 }
 0x445   : > { %v2462_v0 = vpop.f32.mrb[19].mxu1  ;;  %v1359_v1 = vsel %vm1349_vm4, %v1344_v61, -inf }
 0x446   : > { %1360 = vmax.xlane.f32.xlu1 %v1359_v1 }
 0x4c3   : > { %v1355_v4 = vpop.xlane.xlu0 %1354 }
 0x4c4   : > { %v1363_v5 = vsub.f32 %v1252_v47, %v1355_v4 }
 0x4c6   : > { %v1368_v7 = vmul.f32 1.442695, %v1363_v5 }
 0x4c7   : > { %v1352_v16 = vpop.xlane.xlu0 %1351 }
 0x4c8   : > { %2711 = vpow2.f32 %v1368_v7  ;;  %v1362_v20 = vsub.f32 %v1206_v50, %v1352_v16  ;;  %v2700_v50 = vld [vmem:[%s3330_s13 + $0x8] sm:$0xff]  }
 0x4ca   : > { %v1366_v23 = vmul.f32 1.442695, %v1362_v20 }
 0x4cb   : > { %v1358_v17 = vpop.xlane.xlu0 %1357 }
 0x4cc   : > { %v1364_v18 = vsub.f32 %v1298_v55, %v1358_v17  ;;  %v2704_v55 = vld [vmem:[%s3330_s13 + $0x28] sm:$0xff]  }
 0x4ce   : > { %v1370_v19 = vmul.f32 1.442695, %v1364_v18 }
 0x4d2   : > { %v2712_v8 = vpop.eup %2711 }
 0x4d3   : > { %v1361_v9 = vpop.xlane.xlu1 %1360  ;;  %v1377_v10 = vsel %vm1349_vm4, %v2712_v8, 0.0 }
 0x4d4   : > { %v1365_v11 = vsub.f32 %v1344_v61, %v1361_v9  ;;  %1378 = vadd.xlane.f32.xlu0 %v1377_v10  ;;  %v2706_v61 = vld [vmem:[%s3330_s13 + $0x38] sm:$0xff]  }
 0x4d6   : > { %v1372_v12 = vmul.f32 1.442695, %v1365_v11 }
 0x4d8   : > { %2713 = vpow2.f32 %v1372_v12 }
 0x4d9   : > { %2715 = vpow2.f32 %v1370_v19 }
 0x4da   : > { %2717 = vpow2.f32 %v1366_v23 }
 0x4e2   : > { %v2714_v14 = vpop.eup %2713 }
 0x4e3   : > { %v1383_v15 = vsel %vm1349_vm4, %v2714_v14, 0.0  ;;  %v2716_v22 = vpop.eup %2715 }
 0x4e4   : > { %1384 = vadd.xlane.f32.xlu1 %v1383_v15  ;;  %v1380_v24 = vsel %vm1349_vm4, %v2716_v22, 0.0  ;;  %v2718_v25 = vpop.eup %2717 }
 0x4e5   : > { %v1374_v26 = vsel %vm1349_vm4, %v2718_v25, 0.0 }
 0x4ea   : > { %1117 = vrot.lane.b32.xlu0 %v3441_v13, %s2952_s7 }
 0x4f5   : > { %1150 = vrot.lane.b32.xlu1 %v3446_v21, %s2952_s7 }
 0x509   : > { %1381 = vadd.xlane.f32.xlu0 %v1380_v24 }
 0x519   : > { %1375 = vadd.xlane.f32.xlu1 %v1374_v26 }
 0x561   : > { %v1379_v27 = vpop.xlane.xlu0 %1378 }
 0x562   : > { %2719 = vrcp.f32 %v1379_v27 }
 0x565   : > { %v1118_v13 = vpop.permute.xlu0 %1117 }
 0x566   : > { %1121 = vst.msk [vmem:[#allocation7 + $0x4] sm:$0xf] %vm1092_vm1, %v1118_v13 }
 0x56c   : > { %v2720_v28 = vpop.eup %2719 }
 0x56d   : > { %v1391_v21 = vmul.f32 %v2720_v28, %v2712_v8  ;;  %v1399_v29 = vld [vmem:[#allocation7 + $0x4] sm:$0xf] }
 0x56e   : > { %v1453_v30 = vsel %vm1405_vm2, %v1399_v29, 0 }
 0x56f   : > { %2470 = vmatpush3.bf16.msra.mxu1 %v1453_v30  ;;  %v1395_v31 = vpack.c.bf16 %v1391_v21, %v1391_v21 }
 0x570   : > { %2481 = vmatprep.subr.bf16.mxu1 %v2949_v6 }
 0x571   : > { %v1385_v32 = vpop.xlane.xlu1 %1384 }
 0x572   : > { %2721 = vrcp.f32 %v1385_v32  ;;  %2472 = vmatmul.mubr.msk.bf16.vlgmr.msra.gmra.mrb[20].mxu1 %vm1349_vm4, %v1395_v31 }
 0x573   : > { %2483 = vmatprep.mubr.msk.bf16.mxu1 %vm2951_vm0, %v2949_v6 }
 0x575   : > { %v1151_v33 = vpop.permute.xlu1 %1150 }
 0x576   : > { %1154 = vst.msk [vmem:[#allocation7 + $0xc] sm:$0xf] %vm1092_vm1, %v1151_v33 }
 0x57c   : > { %v2722_v34 = vpop.eup %2721 }
 0x57d   : > { %v1393_v35 = vmul.f32 %v2722_v34, %v2714_v14  ;;  %v1401_v36 = vld [vmem:[#allocation7 + $0xc] sm:$0xf] }
 0x57e   : > { %v1545_v37 = vsel %vm1405_vm2, %v1401_v36, 0 }
 0x57f   : > { %2482 = vmatpush3.bf16.msra.mxu1 %v1545_v37  ;;  %v1397_v38 = vpack.c.bf16 %v1393_v35, %v1393_v35 }
 0x582   : > { %2484 = vmatmul.mubr.msk.bf16.vlgmr.msra.gmra.mrb[24].mxu1 %vm1349_vm4, %v1397_v38 }
 0x596   : > { %v1382_v40 = vpop.xlane.xlu0 %1381 }
 0x5a6   : > { %v1376_v39 = vpop.xlane.xlu1 %1375 }
 0x5a7   : > { %2723 = vrcp.f32 %v1376_v39 }
 0x5a8   : > { %2725 = vrcp.f32 %v1382_v40 }
 0x5b1   : > { %v2724_v41 = vpop.eup %2723 }
 0x5b2   : > { %v1390_v42 = vmul.f32 %v2724_v41, %v2718_v25  ;;  %v2726_v45 = vpop.eup %2725 }
 0x5b3   : > { %v1392_v47 = vmul.f32 %v2726_v45, %v2716_v22  ;;  %v2325_v22 = vld [vmem:[%s755_s15] ss:$0 sm:$0xff] }
 0x5b4   : > { %v1394_v44 = vpack.c.bf16 %v1390_v42, %v1390_v42  ;;  %v2334_v42 = vld [vmem:[%s758_s5] ss:$0 sm:$0xff] }
 0x5b5   : > { %v1396_v48 = vpack.c.bf16 %v1392_v47, %v1392_v47  ;;  %v2335_v47 = vld [vmem:[%s761_s22] ss:$0 sm:$0xff] }
 0x5b6   : > { %2466 = vmatmul.mubr.msk.bf16.vlgmr.msra.gmra.mrb[4].mxu0 %vm1349_vm4, %v1394_v44 }
 0x5b7   : > { %2476 = vmatpush3.bf16.msra.mxu0 %v1499_v46  ;;  %2477 = vmatprep.mubr.msk.bf16.mxu0 %vm2951_vm0, %v2949_v6 }
 0x5b8   : > { %2487 = vmatprep.subr.bf16.mxu0 %v2949_v6 }
 0x5be   : > { %2478 = vmatmul.mubr.msk.bf16.vlgmr.msra.gmra.mrb[8].mxu0 %vm1349_vm4, %v1396_v48 }
 0x5bf   : > { %2503 = vmatprep.mubr.msk.bf16.mxu0 %vm2951_vm0, %v2949_v6  ;;  %2488 = vmatpush3.bf16.msra.mxu0 %v2699_v49 }
 0x5c0   : > { %2489 = vmatprep.subr.bf16.mxu0 %v2949_v6 }
 0x5c3   : > { %2490 = vmatpush3.bf16.msra.mxu0 %v2700_v50 }
 0x5c4   : > { %2491 = vmatprep.subr.bf16.mxu0 %v2949_v6 }
 0x5c7   : > { %2492 = vmatpush3.bf16.msra.mxu0 %v2701_v51 }
 0x5c8   : > { %2493 = vmatprep.subr.bf16.mxu0 %v2949_v6 }
 0x5cb   : > { %2494 = vmatpush3.bf16.msra.mxu0 %v2702_v52 }
 0x5cc   : > { %2495 = vmatprep.subr.bf16.mxu0 %v2949_v6 }
 0x5cf   : > { %2496 = vmatpush3.bf16.msra.mxu0 %v2703_v53 }
 0x5d0   : > { %2497 = vmatprep.subr.bf16.mxu0 %v2949_v6 }
 0x5d3   : > { %2498 = vmatpush3.bf16.msra.mxu0 %v2704_v55 }
 0x5d4   : > { %2499 = vmatprep.subr.bf16.mxu0 %v2949_v6 }
 0x5d7   : > { %2500 = vmatpush3.bf16.msra.mxu0 %v2705_v60 }
 0x5d8   : > { %2501 = vmatprep.subr.bf16.mxu0 %v2949_v6 }
 0x5db   : > { %2502 = vmatpush3.bf16.msra.mxu0 %v2706_v61 }
 0x645   : > { %v1489_v54 = vpop.f32.mrb[20].mxu1 }
 0x646   : > { %v1589_v56 = vpack.c.bf16 %v1489_v54, %v1489_v54  ;;  %v2473_v57 = vpop.f32.mrb[21].mxu1 }
 0x647   : > { %v1492_v58 = vpop.f32.mrb[22].mxu1 }
 0x648   : > { %1591 = vrot.lane.b32.xlu0 %v1589_v56, %s2952_s7  ;;  %v2474_v59 = vpop.f32.mrb[23].mxu1 }
 0x655   : > { %v1581_v62 = vpop.f32.mrb[24].mxu1 }
 0x656   : > { %v1602_v63 = vpack.c.bf16 %v1581_v62, %v1581_v62  ;;  %v2485_v0 = vpop.f32.mrb[25].mxu1 }
 0x657   : > { %v1584_v1 = vpop.f32.mrb[26].mxu1 }
 0x658   : > { %v1604_v4 = vrot.slane %v1602_v63, 4  ;;  %v2486_v5 = vpop.f32.mrb[27].mxu1 }
 0x65a   : > { %1605 = vrot.lane.b32.xlu1 %v1604_v4, %s2952_s7 }
 0x689   : > { %v1443_v7 = vpop.f32.mrb[4].mxu0 }
 0x68a   : > { %v1587_v8 = vpack.c.bf16 %v1443_v7, %v1443_v7  ;;  %v2467_v9 = vpop.f32.mrb[5].mxu0 }
 0x68b   : > { %v1446_v10 = vpop.f32.mrb[6].mxu0 }
 0x68c   : > { %1588 = vst.msk [vmem:[#allocation8] sm:$0xf] %vm1092_vm1, %v1587_v8  ;;  %v2468_v11 = vpop.f32.mrb[7].mxu0 }
 0x691   : > { %v1535_v12 = vpop.f32.mrb[8].mxu0 }
 0x692   : > { %v1596_v14 = vpack.c.bf16 %v1535_v12, %v1535_v12  ;;  %v2479_v6 = vpop.f32.mrb[9].mxu0 }
 0x693   : > { %v1538_v15 = vpop.f32.mrb[10].mxu0 }
 0x694   : > { %v1598_v16 = vrot.slane %v1596_v14, 4  ;;  %v2480_v17 = vpop.f32.mrb[11].mxu0 }
 0x696   : > { %1601 = vst.msk [vmem:[#allocation8] sm:$0xf0] %vm1600_vm5, %v1598_v16 }
 0x6ba   : > { %v1592_v18 = vpop.permute.xlu0 %1591 }
 0x6bb   : > { %1595 = vst.msk [vmem:[#allocation8] sm:$0xf] %vm1594_vm6, %v1592_v18 }
 0x6cc   : > { %v1606_v19 = vpop.permute.xlu1 %1605 }
 0x6cd   : > { %1609 = vst.msk [vmem:[#allocation8] sm:$0xf0] %vm1608_vm7, %v1606_v19 }
 0x6d4   : > { %v1610_v20 = vld [vmem:[#allocation8] sm:$0xff] }
 0x6d5   : > { %2504 = vmatmul.mubr.bf16.vlgmr.msra.gmra.mrb[12].mxu0 %v1610_v20 }
 0x7a8   : > { %v1716_v23 = vpop.f32.mrb[12].mxu0 }
 0x7a9   : > { %v1717_v24 = vadd.f32 %v2325_v22, %v1716_v23  ;;  %v2505_v25 = vpop.f32.mrb[13].mxu0 }
 0x7aa   : > { %v1719_v26 = vpop.f32.mrb[14].mxu0 }
 0x7ab   : > { %v1723_v27 = vadd.f32 %v1717_v24, %v3370_v2  ;;  %v1720_v13 = vadd.f32 %v2325_v22, %v1719_v26  ;;  %v2506_v28 = vpop.f32.mrb[15].mxu0 }
 0x7ad   : > { %1725 = vst [vmem:[#allocation2] sm:$0xff] %v1723_v27  ;;  %v1724_v21 = vadd.f32 %v1720_v13, %v3372_v3  ;;  %1729 = vadd.xlane.f32.xlu1 %v1723_v27 }
 0x7af   : > { %1726 = vst [vmem:[#allocation2 + $0x8] sm:$0xff] %v1724_v21  ;;  %1731 = vadd.xlane.f32.xlu0 %v1724_v21 }
 0x83a   : > { %v1730_v29 = vpop.xlane.xlu1 %1729 }
 0x83b   : > { %v1733_v30 = vmul.f32 0.0078125, %v1730_v29 }
 0x83c   : > { %v1732_v31 = vpop.xlane.xlu0 %1731 }
 0x83d   : > { %v1735_v32 = vsub.f32 %v1723_v27, %v1733_v30  ;;  %v1734_v33 = vmul.f32 0.0078125, %v1732_v31 }
 0x83f   : > { %v1736_v34 = vsub.f32 %v1724_v21, %v1734_v33  ;;  %v1737_v35 = vmul.f32 %v1735_v32, %v1735_v32 }
 0x841   : > { %1739 = vadd.xlane.f32.xlu0 %v1737_v35  ;;  %v1738_v36 = vmul.f32 %v1736_v34, %v1736_v34 }
 0x843   : > { %1741 = vadd.xlane.f32.xlu1 %v1738_v36 }
 0x8ce   : > { %v1740_v2 = vpop.xlane.xlu0 %1739 }
 0x8cf   : > { %v1743_v37 = vmul.f32 0.0078125, %v1740_v2 }
 0x8d0   : > { %v1742_v38 = vpop.xlane.xlu1 %1741 }
 0x8d1   : > { %v1745_v39 = vadd.f32 1e-05, %v1743_v37  ;;  %v1744_v3 = vmul.f32 0.0078125, %v1742_v38 }
 0x8d3   : > { %2727 = vrsqrt.f32 %v1745_v39  ;;  %v1746_v40 = vadd.f32 1e-05, %v1744_v3 }
 0x8d5   : > { %2729 = vrsqrt.f32 %v1746_v40 }
 0x8dd   : > { %v2728_v41 = vpop.eup %2727 }
 0x8de   : > { %v1749_v43 = vmul.f32 %v2728_v41, %v1735_v32 }
 0x8df   : > { %v2730_v44 = vpop.eup %2729 }
 0x8e0   : > { %v1757_v45 = vmul.f32 %v2334_v42, %v1749_v43  ;;  %v1750_v46 = vmul.f32 %v2730_v44, %v1736_v34 }
 0x8e2   : > { %v1758_v48 = vmul.f32 %v2334_v42, %v1750_v46  ;;  %v1765_v49 = vadd.f32 %v2335_v47, %v1757_v45 }
 0x8e4   : > { %v1766_v50 = vadd.f32 %v2335_v47, %v1758_v48 }
 0x8e6   : > { %v1767_v51 = vpack.c.bf16 %v1766_v50, %v1765_v49 }
 0x8e8   : > { %1768 = vst [vmem:[#allocation3] sm:$0xff] %v1767_v51 }
 0x8e9 PF: > { %v2731_v52 = vld [vmem:[%s3305_s10] sm:$0xff]   ;;  %v2953_v53 = vmov 0.0   ;;  %v2732_v54 = vld [vmem:[%s3305_s10 + $0x8] sm:$0xff]   ;;  %vm2954_vm8 = vmmov 0   ;;  %v2733_v55 = vld [vmem:[%s3305_s10 + $0x10] sm:$0xff]   ;;  %p2353_p12 = scmp.ne.s32.totalorder %s2923_s27, 1 }
 0x8ea   : > { %2507 = vmatprep.subr.bf16.mxu0 %v2953_v53  ;;  %2527 = vmatprep.subr.bf16.mxu1 %v2953_v53  ;;  %v2739_v56 = vld [vmem:[%s3360_s1] sm:$0xff]   ;;  %v2734_v57 = vld [vmem:[%s3305_s10 + $0x18] sm:$0xff]   ;;  %v2740_v58 = vld [vmem:[%s3360_s1 + $0x8] sm:$0xff]   ;;  %p2355_p9 = scmp.ne.s32.totalorder (!%p2353_p12), %s2927_s28, 1 }
 0x8eb   : > { %2508 = vmatpush3.bf16.msra.mxu0 %v2731_v52  ;;  %2523 = vmatprep.mubr.msk.bf16.mxu0 %vm2954_vm8, %v2953_v53  ;;  %v2735_v59 = vld [vmem:[%s3305_s10 + $0x20] sm:$0xff]   ;;  %v2736_v60 = vld [vmem:[%s3305_s10 + $0x28] sm:$0xff]   ;;  %v2737_v61 = vld [vmem:[%s3305_s10 + $0x30] sm:$0xff]  }
 0x8ec   : > { %2509 = vmatprep.subr.bf16.mxu0 %v2953_v53  ;;  %2543 = vmatprep.mubr.msk.bf16.mxu1 %vm2954_vm8, %v2953_v53  ;;  %v2738_v62 = vld [vmem:[%s3305_s10 + $0x38] sm:$0xff]   ;;  %v2741_v0 = vld [vmem:[%s3360_s1 + $0x10] sm:$0xff]   ;;  %v2743_v4 = vld [vmem:[%s3360_s1 + $0x20] sm:$0xff]  }
 0x8ed   : > { %2528 = vmatpush3.bf16.msra.mxu1 %v2739_v56  ;;  %v2742_v1 = vld [vmem:[%s3360_s1 + $0x18] sm:$0xff]   ;;  %v2744_v5 = vld [vmem:[%s3360_s1 + $0x28] sm:$0xff]   ;;  %v2745_v7 = vld [vmem:[%s3360_s1 + $0x30] sm:$0xff]  }
 0x8ee   : > { %2529 = vmatprep.subr.bf16.mxu1 %v2953_v53  ;;  %v2746_v8 = vld [vmem:[%s3360_s1 + $0x38] sm:$0xff]   ;;  %v2336_v9 = vld [vmem:[%s768_s30] ss:$0 sm:$0xff]  ;;  %v2011_v37 = vld [vmem:[#allocation2 + $0x8] sm:$0xff] (!%p2353_p12) }
 0x8ef   : > { %2510 = vmatpush3.bf16.msra.mxu0 %v2732_v54  ;;  %v1771_v63 = vld [vmem:[#allocation3] sm:$0xff]  ;;  %v1894_v13 = vld [vmem:[#allocation4] sm:$0xff]  ;;  %v1895_v21 = vld [vmem:[#allocation4 + $0x8] sm:$0xff] }
 0x8f0   : > { %2511 = vmatprep.subr.bf16.mxu0 %v2953_v53  ;;  %v2010_v34 = vld [vmem:[#allocation2] sm:$0xff] (!%p2353_p12) }
 0x8f1   : > { %2530 = vmatpush3.bf16.msra.mxu1 %v2740_v58  ;;  %v2354_v36 = vld [vmem:[%s772_s4] ss:$0 sm:$0xff] (!%p2353_p12) }
 0x8f2   : > { %2531 = vmatprep.subr.bf16.mxu1 %v2953_v53 }
 0x8f3   : > { %2512 = vmatpush3.bf16.msra.mxu0 %v2733_v55 }
 0x8f4   : > { %2513 = vmatprep.subr.bf16.mxu0 %v2953_v53 }
 0x8f5   : > { %2532 = vmatpush3.bf16.msra.mxu1 %v2741_v0 }
 0x8f6   : > { %2533 = vmatprep.subr.bf16.mxu1 %v2953_v53 }
 0x8f7   : > { %2514 = vmatpush3.bf16.msra.mxu0 %v2734_v57 }
 0x8f8   : > { %2515 = vmatprep.subr.bf16.mxu0 %v2953_v53 }
 0x8f9   : > { %2534 = vmatpush3.bf16.msra.mxu1 %v2742_v1 }
 0x8fa   : > { %2535 = vmatprep.subr.bf16.mxu1 %v2953_v53 }
 0x8fb   : > { %2516 = vmatpush3.bf16.msra.mxu0 %v2735_v59 }
 0x8fc   : > { %2517 = vmatprep.subr.bf16.mxu0 %v2953_v53 }
 0x8fd   : > { %2536 = vmatpush3.bf16.msra.mxu1 %v2743_v4 }
 0x8fe   : > { %2537 = vmatprep.subr.bf16.mxu1 %v2953_v53 }
 0x8ff   : > { %2518 = vmatpush3.bf16.msra.mxu0 %v2736_v60 }
 0x900   : > { %2519 = vmatprep.subr.bf16.mxu0 %v2953_v53 }
 0x901   : > { %2538 = vmatpush3.bf16.msra.mxu1 %v2744_v5 }
 0x902   : > { %2539 = vmatprep.subr.bf16.mxu1 %v2953_v53 }
 0x903   : > { %2520 = vmatpush3.bf16.msra.mxu0 %v2737_v61 }
 0x904   : > { %2521 = vmatprep.subr.bf16.mxu0 %v2953_v53 }
 0x905   : > { %2540 = vmatpush3.bf16.msra.mxu1 %v2745_v7 }
 0x906   : > { %2541 = vmatprep.subr.bf16.mxu1 %v2953_v53 }
 0x907   : > { %2522 = vmatpush3.bf16.msra.mxu0 %v2738_v62 }
 0x909   : > { %2542 = vmatpush3.bf16.msra.mxu1 %v2746_v8 }
 0x90a   : > { %2524 = vmatmul.mubr.bf16.vlgmr.msra.gmra.mrb[0].mxu0 %v1771_v63 }
 0x9dd   : > { %v1877_v10 = vpop.f32.mrb[0].mxu0 }
 0x9de   : > { %v1878_v11 = vadd.f32 %v2336_v9, %v1877_v10  ;;  %v2525_v12 = vpop.f32.mrb[1].mxu0 }
 0x9df   : > { %v1880_v14 = vpop.f32.mrb[2].mxu0 }
 0x9e0   : > { %v1886_v6 = vmul.f32 0.70710677, %v1878_v11  ;;  %v1881_v15 = vadd.f32 %v2336_v9, %v1880_v14  ;;  %v2526_v16 = vpop.f32.mrb[3].mxu0  ;;  %v1884_v22 = vmul.f32 0.5, %v1878_v11 }
 0x9e2   : > { %2747 = verf.f32 %v1886_v6  ;;  %v1887_v17 = vmul.f32 0.70710677, %v1881_v15  ;;  %v1885_v23 = vmul.f32 0.5, %v1881_v15 }
 0x9e4   : > { %2749 = verf.f32 %v1887_v17 }
 0x9ec   : > { %v2748_v18 = vpop.eup %2747 }
 0x9ed   : > { %v1890_v19 = vadd.f32 1.0, %v2748_v18 }
 0x9ee   : > { %v2750_v20 = vpop.eup %2749 }
 0x9ef   : > { %v1891_v24 = vadd.f32 1.0, %v2750_v20  ;;  %v1892_v25 = vmul.f32 %v1890_v19, %v1884_v22 }
 0x9f1   : > { %v1893_v26 = vmul.f32 %v1891_v24, %v1885_v23 }
 0x9f3   : > { %v1896_v27 = vpack.c.bf16 %v1893_v26, %v1892_v25 }
 0x9f5   : > { %2544 = vmatmul.mubr.bf16.vlgmr.msra.gmra.mrb[0].mxu1 %v1896_v27 }
 0xac7   : > { %2009 = sbr.rel (%p2353_p12) target bundleno = 3091 (0xc13), region = 108 }
 0xac8   : > { %v1995_v28 = vpop.f32.mrb[0].mxu1 }
 0xac9   : > { %v2002_v29 = vadd.f32 %v1995_v28, %v1894_v13  ;;  %v2545_v30 = vpop.f32.mrb[1].mxu1 }
 0xaca   : > { %v1998_v31 = vpop.f32.mrb[2].mxu1 }
 0xacb   : > { %2004 = vst [vmem:[#allocation4] sm:$0xff] %v2002_v29  ;;  %v2003_v32 = vadd.f32 %v1998_v31, %v1895_v21  ;;  %v2546_v33 = vpop.f32.mrb[3].mxu1 }
 0xacd   : > { %2005 = vst [vmem:[#allocation4 + $0x8] sm:$0xff] %v2003_v32 }
 0xace   : > { %s3724_s17 = sld [smem:[#allocation39_spill]] (!%p2355_p9)  ;;  %s3725_s26 = sld [smem:[#allocation40_spill]] (!%p2355_p9) }
 0xacf   : > { %s3726_s8 = sld [smem:[#allocation41_spill]] (!%p2355_p9) }
 0xad2   : > { %v2012_v35 = vld [vmem:[#allocation4] sm:$0xff] }
 0xad3   : > { %v2014_v2 = vadd.f32 %v2012_v35, %v2010_v34  ;;  %2030 = sbr.rel (%p2355_p9) target bundleno = 3091 (0xc13), region = 112 }
 0xad4   : > { %v2013_v38 = vld [vmem:[#allocation4 + $0x8] sm:$0xff] }
 0xad5   : > { %v2015_v39 = vadd.f32 %v2013_v38, %v2011_v37  ;;  %v2023_v3 = vadd.f32 %v2354_v36, %v2014_v2  ;;  %v2356_v56 = vld [vmem:[%s3724_s17] ss:$0 sm:$0xff] (!%p2355_p9) }
 0xad6   : > { %v2357_v58 = vld [vmem:[%s3725_s26] ss:$0 sm:$0xff] (!%p2355_p9) }
 0xad7   : > { %v2024_v40 = vadd.f32 %v2354_v36, %v2015_v39  ;;  %2025 = vst [vmem:[#allocation2] sm:$0xff] %v2023_v3  ;;  %2033 = vadd.xlane.f32.xlu0 (!%p2355_p9), %v2023_v3 }
 0xad9   : > { %2026 = vst [vmem:[#allocation2 + $0x8] sm:$0xff] %v2024_v40 }
 0xadb   : > { %2035 = vadd.xlane.f32.xlu0 %v2024_v40 }
 0xb64   : > { %v2034_v41 = vpop.xlane.xlu0 %2033 }
 0xb65   : > { %v2038_v42 = vmul.f32 0.0078125, %v2034_v41 }
 0xb67   : > { %v2040_v43 = vsub.f32 %v2023_v3, %v2038_v42 }
 0xb68   : > { %v2036_v44 = vpop.xlane.xlu0 %2035 }
 0xb69   : > { %v2039_v45 = vmul.f32 0.0078125, %v2036_v44  ;;  %v2042_v46 = vmul.f32 %v2040_v43, %v2040_v43 }
 0xb6b   : > { %v2041_v47 = vsub.f32 %v2024_v40, %v2039_v45  ;;  %2044 = vadd.xlane.f32.xlu1 %v2042_v46 }
 0xb6d   : > { %v2043_v48 = vmul.f32 %v2041_v47, %v2041_v47 }
 0xb6f   : > { %2046 = vadd.xlane.f32.xlu1 %v2043_v48 }
 0xbf8   : > { %v2045_v49 = vpop.xlane.xlu1 %2044 }
 0xbf9   : > { %v2048_v50 = vmul.f32 0.0078125, %v2045_v49 }
 0xbfb   : > { %v2050_v51 = vadd.f32 1e-05, %v2048_v50 }
 0xbfc   : > { %v2047_v52 = vpop.xlane.xlu1 %2046 }
 0xbfd   : > { %2751 = vrsqrt.f32 %v2050_v51  ;;  %v2049_v53 = vmul.f32 0.0078125, %v2047_v52 }
 0xbff   : > { %v2051_v54 = vadd.f32 1e-05, %v2049_v53 }
 0xc01   : > { %2753 = vrsqrt.f32 %v2051_v54 }
 0xc07   : > { %v2752_v55 = vpop.eup %2751 }
 0xc08   : > { %v2054_v57 = vmul.f32 %v2752_v55, %v2040_v43 }
 0xc0a   : > { %v2062_v59 = vmul.f32 %v2356_v56, %v2054_v57 }
 0xc0b   : > { %v2754_v60 = vpop.eup %2753 }
 0xc0c   : > { %v2070_v61 = vadd.f32 %v2357_v58, %v2062_v59  ;;  %v2055_v62 = vmul.f32 %v2754_v60, %v2041_v47 }
 0xc0e   : > { %2072 = vst [vmem:[%s3726_s8] sm:$0xff] %v2070_v61  ;;  %v2063_v63 = vmul.f32 %v2356_v56, %v2055_v62 }
 0xc10   : > { %v2071_v0 = vadd.f32 %v2357_v58, %v2063_v63 }
 0xc12   : > { %2073 = vst [vmem:[%s3726_s8 + $0x8] sm:$0xff] %v2071_v0 }
 0xc13 PF: > { %s32_s0 = sadd.s32 1, %s2939_s0   ;;  %s3727_s21 = sld [smem:[#allocation16_spill]] }
 0xc14   : > { %p29_p11 = scmp.ge.s32.totalorder %s32_s0, 6   ;;  %s3728_s22 = sld [smem:[#allocation17_spill]] }
 0xc15   : > { %s3729_s23 = sld [smem:[#allocation24_spill]]  ;;  %s3730_s24 = sld [smem:[#allocation18_spill]] }
 0xc16   : > { %s3731_s25 = sld [smem:[#allocation19_spill]]  ;;  %s3732_s26 = sld [smem:[#allocation25_spill]] }
 0xc17   : > { %s3733_s27 = sld [smem:[#allocation20_spill]]  ;;  %s3734_s28 = sld [smem:[#allocation21_spill]] }
 0xc18   : > { %s3735_s29 = sld [smem:[#allocation22_spill]]  ;;  %s3736_s30 = sld [smem:[#allocation23_spill]] }
 0xc19   :  { %31 = sbr.rel (!%p29_p11) target bundleno = 26 (0x1a), region = 196 }
 0xc20   :  { %2085 = vsyncpa [#allocation10], 1 }
 0xc21   :  { %2087 = vsyncpa [#allocation10 + $0x1], 1 }
 0xc22   :  { %2088 = vsyncpa [#allocation12], 1 }
 0xc23   :  { %2090 = vsyncpa [#allocation12 + $0x1], 1 }

</bundles_post_ra>
